<compile_context>
chip_gen: v7x
topology: tpu7x:2x2x1
jax: 0.10.0
libtpu: 0.0.40
codegen_flags: <defaults>
</compile_context>

<pallas_src>
import functools

import jax
import jax.numpy as jnp
from jax.experimental import pallas as pl
from jax.experimental.pallas import tpu as pltpu


def _round_up(x, m):
    return (x + m - 1) // m * m


def _vmem_budget_bytes():
    """~75% of physical VMEM (headroom for compiler-internal scratch)."""
    try:
        cap = int(pltpu.get_tpu_info().vmem_capacity_bytes)
    except Exception:  # not on TPU / older jax: assume the smallest (v7x 64 MiB)
        cap = 64 * 2 ** 20
    return (cap * 3) // 4


# --------------------------------------------------------------------------
# Kernel
# --------------------------------------------------------------------------
def _attn_edge_kernel(src_ref, dst_ref, edge_ref,
                      wq_ref, bq_ref, wk_ref, bk_ref, we_ref, be_ref,
                      w1_ref, b1_ref, w2_ref, b2_ref,
                      logits_ref, *attn_ref, return_attention):
    """One row-tile of the forward pass.

    MXU matmuls run in the weight dtype (f32 or bf16) with f32 accumulation;
    all element-wise math (sigmoid blend, ReLU, bias adds) stays in f32
    (v5e has no bf16 VPU/EUP path).
    """
    wd = wq_ref.dtype

    q = jnp.dot(src_ref[...].astype(wd), wq_ref[...],
                preferred_element_type=jnp.float32) + bq_ref[...]
    k = jnp.dot(dst_ref[...].astype(wd), wk_ref[...],
                preferred_element_type=jnp.float32) + bk_ref[...]
    e = jnp.dot(edge_ref[...].astype(we_ref.dtype), we_ref[...],
                preferred_element_type=jnp.float32) + be_ref[...]

    # attn_score = sum(q*k, -1, keepdim); attn_weight = sigmoid(score).
    # Lane reduce uses the XLU; only move it to the MXU ((q*k) @ ones) if a
    # bundle dump shows the XLU binding.
    score = jnp.sum(q * k, axis=-1, keepdims=True)
    attn_w = jax.nn.sigmoid(score)

    # attn_out = w*k + (1-w)*q ; combined = attn_out + e      (f32 on the VPU)
    combined = attn_w * k + (1.0 - attn_w) * q + e

    # Output MLP: Linear -> ReLU -> Linear.
    h = jnp.dot(combined.astype(w1_ref.dtype), w1_ref[...],
                preferred_element_type=jnp.float32) + b1_ref[...]
    h = jnp.maximum(h, 0.0)
    logits = jnp.dot(h.astype(w2_ref.dtype), w2_ref[...],
                     preferred_element_type=jnp.float32) + b2_ref[...]

    logits_ref[...] = logits.astype(logits_ref.dtype)
    if return_attention:
        attn_ref[0][...] = attn_w.astype(attn_ref[0].dtype)


# --------------------------------------------------------------------------
# Wrapper
# --------------------------------------------------------------------------
def prepare_params(params, matmul_dtype=None):
    """One-time parameter prep (call ONCE, not per forward).

    Casts weights to the matmul dtype; biases stay f32 as (1, out) rows.
    Default on TPU is bf16 matmul weights (native bf16 MXU on v5e/v6e/v7x,
    f32 accumulation inside the kernel); f32 elsewhere.
    """
    if matmul_dtype is None:
        matmul_dtype = (jnp.bfloat16 if jax.devices()[0].platform == "tpu"
                        else jnp.float32)
    f32 = jnp.float32

    def w(name):
        return params[name].astype(matmul_dtype)

    def b(name):
        return params[name].reshape(1, -1).astype(f32)

    return {
        "wq": w("wq"), "bq": b("bq"),
        "wk": w("wk"), "bk": b("bk"),
        "we": w("we"), "be": b("be"),
        "w1": w("w1"), "b1": b("b1"),
        "w2": w("w2"), "b2": b("b2"),
    }


def attention_edge_classifier_temporal(src_x, dst_x, edge_attr, prepared, *,
                                       block_e=1024, return_attention=False):
    """Forward pass. src_x, dst_x: [E, H]; edge_attr: [E, De].

    `prepared` is the output of prepare_params().
    Returns logits [E, C] (and attention weights [E] if return_attention).
    """
    E, H = src_x.shape
    De = edge_attr.shape[-1]
    C = prepared["w2"].shape[-1]
    f32 = jnp.float32
    wdtype = prepared["wq"].dtype

    # Row tile: multiple of 8, big enough to amortize per-step pipeline
    # overhead, but capped so the grid keeps >= 2 steps (both v7x TensorCores
    # get work through the "parallel" grid axis).
    half = _round_up(pl.cdiv(E, 2), 8)
    block_e = max(8, min(_round_up(block_e, 8), half))
    grid = (pl.cdiv(E, block_e),)      # last block may be partial; Pallas masks it

    # --- VMEM budget (includes live intermediates; sized for the
    # --- double-buffered-weight fallback as well). ---------------------------
    def lanes(n):
        return _round_up(max(n, 1), 128)

    def subl(n):
        return _round_up(max(n, 1), 8)

    w_itm = jnp.dtype(wdtype).itemsize
    a_itm = max(src_x.dtype.itemsize, dst_x.dtype.itemsize,
                edge_attr.dtype.itemsize)

    stream = 2 * block_e * (2 * lanes(H) + lanes(De)) * a_itm      # rows, 2 bufs
    outs = 2 * block_e * (lanes(C) + lanes(1)) * 4                 # logits + attn
    weight_vmem = (3 * subl(H) * lanes(H) + subl(De) * lanes(H)
                   + subl(H) * lanes(C)) * w_itm
    bias_vmem = 5 * subl(1) * lanes(H) * 4
    live = block_e * (5 * lanes(H) + lanes(C) + 2 * lanes(1)) * 4  # q,k,e,comb,h,...
    est = stream + outs + 2 * (weight_vmem + bias_vmem) + live
    vmem_limit = int(min(_vmem_budget_bytes(), max(16 * 2 ** 20, 2 * est)))

    # --- Cost estimate (helps XLA schedule surrounding ops). -----------------
    param_bytes = (2 * H * H + De * H + H * H + H * C) * w_itm + (4 * H + C) * 4
    cost = pl.CostEstimate(
        flops=int(2 * E * (3 * H * H + De * H + H * C)),
        transcendentals=int(E),
        bytes_accessed=int(E * (2 * H + De) * a_itm + param_bytes
                           + E * (C + 1) * 4),
    )

    kernel = functools.partial(_attn_edge_kernel,
                               return_attention=return_attention)

    row_spec_h = pl.BlockSpec((block_e, H), lambda i: (i, 0))
    row_spec_de = pl.BlockSpec((block_e, De), lambda i: (i, 0))

    def build(single_buffer_weights):
        def const_spec(shape):
            # Weights/biases never change across the grid -> one resident VMEM
            # buffer (matters at realistic H on v7x's 64 MiB VMEM).
            if single_buffer_weights:
                return pl.BlockSpec(shape, lambda i: (0, 0),
                                    pipeline_mode=pl.Buffered(1))
            return pl.BlockSpec(shape, lambda i: (0, 0))

        in_specs = [
            row_spec_h, row_spec_h, row_spec_de,
            const_spec((H, H)), const_spec((1, H)),    # Wq, bq
            const_spec((H, H)), const_spec((1, H)),    # Wk, bk
            const_spec((De, H)), const_spec((1, H)),   # We, be
            const_spec((H, H)), const_spec((1, H)),    # W1, b1
            const_spec((H, C)), const_spec((1, C)),    # W2, b2
        ]
        out_shape = [jax.ShapeDtypeStruct((E, C), f32)]
        out_specs = [pl.BlockSpec((block_e, C), lambda i: (i, 0))]
        if return_attention:
            out_shape.append(jax.ShapeDtypeStruct((E, 1), f32))
            out_specs.append(pl.BlockSpec((block_e, 1), lambda i: (i, 0)))

        return pl.pallas_call(
            kernel,
            out_shape=tuple(out_shape),
            grid_spec=pltpu.PrefetchScalarGridSpec(
                num_scalar_prefetch=0,
                grid=grid,
                in_specs=in_specs,
                out_specs=tuple(out_specs),
            ),
            compiler_params=pltpu.CompilerParams(
                dimension_semantics=("parallel",),
                vmem_limit_bytes=vmem_limit,
            ),
            cost_estimate=cost,
        )

    args = (src_x, dst_x, edge_attr,
            prepared["wq"], prepared["bq"], prepared["wk"], prepared["bk"],
            prepared["we"], prepared["be"], prepared["w1"], prepared["b1"],
            prepared["w2"], prepared["b2"])

    try:
        result = build(True)(*args)
    except (TypeError, NotImplementedError, pltpu.LoweringException):
        # Pallas version without single-buffer pipeline_mode; vmem_limit was
        # already sized for double-buffered weights.
        result = build(False)(*args)

    if return_attention:
        logits, attn = result
        return logits, attn[:, 0]            # squeeze(-1)
    (logits,) = result
    return logits


# --------------------------------------------------------------------------
# Reference + demo
# --------------------------------------------------------------------------
def init_params(key, hidden_dim, edge_dim, num_classes):
    """Deterministic synthetic init. Weights stored [in, out], biases [1, out]."""
    ks = jax.random.split(key, 10)
    s = 0.1
    return {
        "wq": s * jax.random.normal(ks[0], (hidden_dim, hidden_dim), jnp.float32),
        "bq": s * jax.random.normal(ks[1], (1, hidden_dim), jnp.float32),
        "wk": s * jax.random.normal(ks[2], (hidden_dim, hidden_dim), jnp.float32),
        "bk": s * jax.random.normal(ks[3], (1, hidden_dim), jnp.float32),
        "we": s * jax.random.normal(ks[4], (edge_dim, hidden_dim), jnp.float32),
        "be": s * jax.random.normal(ks[5], (1, hidden_dim), jnp.float32),
        "w1": s * jax.random.normal(ks[6], (hidden_dim, hidden_dim), jnp.float32),
        "b1": s * jax.random.normal(ks[7], (1, hidden_dim), jnp.float32),
        "w2": s * jax.random.normal(ks[8], (hidden_dim, num_classes), jnp.float32),
        "b2": s * jax.random.normal(ks[9], (1, num_classes), jnp.float32),
    }


def reference_forward(src_x, dst_x, edge_attr, p, return_attention=False):
    """Pure-JAX reference matching the PyTorch module exactly."""
    q = src_x @ p["wq"] + p["bq"]
    k = dst_x @ p["wk"] + p["bk"]
    e = edge_attr @ p["we"] + p["be"]
    score = jnp.sum(q * k, axis=-1, keepdims=True)
    w = jax.nn.sigmoid(score)
    combined = w * k + (1.0 - w) * q + e
    h = jnp.maximum(combined @ p["w1"] + p["b1"], 0.0)
    logits = h @ p["w2"] + p["b2"]
    if return_attention:
        return logits, w[:, 0]
    return logits


if __name__ == "__main__":
    # Shapes consistent with the module's forward:
    #   src_x, dst_x : [num_edges, hidden_dim]
    #   edge_attr    : [num_edges, edge_dim]
    # num_edges deliberately NOT a multiple of the row tile -> exercises the
    # partial-last-block (masked) path.
    num_edges, hidden_dim, edge_dim, num_classes = 300, 32, 16, 8

    key = jax.random.PRNGKey(0)
    k_src, k_dst, k_edge, k_par = jax.random.split(key, 4)
    src_x = jax.random.normal(k_src, (num_edges, hidden_dim), jnp.float32)
    dst_x = jax.random.normal(k_dst, (num_edges, hidden_dim), jnp.float32)
    edge_attr = jax.random.normal(k_edge, (num_edges, edge_dim), jnp.float32)
    params = init_params(k_par, hidden_dim, edge_dim, num_classes)

    ref_logits, ref_attn = reference_forward(src_x, dst_x, edge_attr, params,
                                             return_attention=True)

    # 1) f32 matmul path, attention returned. Default block_e gets capped so
    #    the grid has 2 steps (152-row tiles, masked partial tail).
    prep_f32 = prepare_params(params, jnp.float32)
    logits, attn = attention_edge_classifier_temporal(
        src_x, dst_x, edge_attr, prep_f32, return_attention=True)
    logits = jax.block_until_ready(logits)
    attn = jax.block_until_ready(attn)
    assert logits.shape == (num_edges, num_classes)
    assert attn.shape == (num_edges,)
    assert jnp.allclose(logits, ref_logits, atol=1e-4, rtol=1e-4), "logits mismatch"
    assert jnp.allclose(attn, ref_attn, atol=1e-4, rtol=1e-4), "attn mismatch"

    # 2) Logits-only variant, smaller explicit tile (grid of 3, partial tail).
    logits_only = attention_edge_classifier_temporal(
        src_x, dst_x, edge_attr, prep_f32, block_e=128, return_attention=False)
    logits_only = jax.block_until_ready(logits_only)
    assert jnp.allclose(logits_only, ref_logits, atol=1e-4, rtol=1e-4)

    # 3) bf16 matmul path (TPU default): bf16 activations + weights, f32 MXU
    #    accumulation, f32 element-wise. Loose tolerance check only.
    prep_bf16 = prepare_params(params, jnp.bfloat16)
    logits_bf16 = attention_edge_classifier_temporal(
        src_x.astype(jnp.bfloat16), dst_x.astype(jnp.bfloat16),
        edge_attr.astype(jnp.bfloat16), prep_bf16, return_attention=False)
    logits_bf16 = jax.block_until_ready(logits_bf16)
    assert logits_bf16.shape == (num_edges, num_classes)
    assert float(jnp.max(jnp.abs(logits_bf16 - ref_logits))) < 0.25

    print("KERNEL_OK")
</pallas_src>

<mosaic_0001>
module attributes {stable_mosaic.version = 11 : i64} {
  func.func @_attn_edge_kernel(%arg0: i32, %arg1: memref<152x32xf32, #tpu.memory_space<vmem>>, %arg2: memref<152x32xf32, #tpu.memory_space<vmem>>, %arg3: memref<152x16xf32, #tpu.memory_space<vmem>>, %arg4: memref<32x32xf32, #tpu.memory_space<vmem>>, %arg5: memref<1x32xf32, #tpu.memory_space<vmem>>, %arg6: memref<32x32xf32, #tpu.memory_space<vmem>>, %arg7: memref<1x32xf32, #tpu.memory_space<vmem>>, %arg8: memref<16x32xf32, #tpu.memory_space<vmem>>, %arg9: memref<1x32xf32, #tpu.memory_space<vmem>>, %arg10: memref<32x32xf32, #tpu.memory_space<vmem>>, %arg11: memref<1x32xf32, #tpu.memory_space<vmem>>, %arg12: memref<32x8xf32, #tpu.memory_space<vmem>>, %arg13: memref<1x8xf32, #tpu.memory_space<vmem>>, %arg14: memref<152x8xf32, #tpu.memory_space<vmem>>, %arg15: memref<152x1xf32, #tpu.memory_space<vmem>>) attributes {dimension_semantics = [#tpu.dimension_semantics<parallel>], iteration_bounds = array<i64: 2>, scalar_prefetch = 0 : i64, scratch_operands = 0 : i64, tpu.core_type = #tpu.core_type<tc>, window_params = [{transform_indices = @transform_0, window_bounds = array<i64: 152, 32>}, {transform_indices = @transform_1, window_bounds = array<i64: 152, 32>}, {transform_indices = @transform_2, window_bounds = array<i64: 152, 16>}, {pipeline_mode = #tpu.pipeline_mode<synchronous>, transform_indices = @transform_3, window_bounds = array<i64: 32, 32>}, {pipeline_mode = #tpu.pipeline_mode<synchronous>, transform_indices = @transform_4, window_bounds = array<i64: 1, 32>}, {pipeline_mode = #tpu.pipeline_mode<synchronous>, transform_indices = @transform_5, window_bounds = array<i64: 32, 32>}, {pipeline_mode = #tpu.pipeline_mode<synchronous>, transform_indices = @transform_6, window_bounds = array<i64: 1, 32>}, {pipeline_mode = #tpu.pipeline_mode<synchronous>, transform_indices = @transform_7, window_bounds = array<i64: 16, 32>}, {pipeline_mode = #tpu.pipeline_mode<synchronous>, transform_indices = @transform_8, window_bounds = array<i64: 1, 32>}, {pipeline_mode = #tpu.pipeline_mode<synchronous>, transform_indices = @transform_9, window_bounds = array<i64: 32, 32>}, {pipeline_mode = #tpu.pipeline_mode<synchronous>, transform_indices = @transform_10, window_bounds = array<i64: 1, 32>}, {pipeline_mode = #tpu.pipeline_mode<synchronous>, transform_indices = @transform_11, window_bounds = array<i64: 32, 8>}, {pipeline_mode = #tpu.pipeline_mode<synchronous>, transform_indices = @transform_12, window_bounds = array<i64: 1, 8>}, {transform_indices = @transform_13, window_bounds = array<i64: 152, 8>}, {transform_indices = @transform_14, window_bounds = array<i64: 152, 1>}]} {
    %c0 = arith.constant 0 : index
    %c0_0 = arith.constant 0 : index
    %0 = vector.load %arg1[%c0, %c0_0] : memref<152x32xf32, #tpu.memory_space<vmem>>, vector<152x32xf32>
    %c0_1 = arith.constant 0 : index
    %c0_2 = arith.constant 0 : index
    %1 = vector.load %arg4[%c0_1, %c0_2] : memref<32x32xf32, #tpu.memory_space<vmem>>, vector<32x32xf32>
    %cst = arith.constant dense<0.000000e+00> : vector<152x32xf32>
    %2 = tpu.matmul %0, %1, %cst {dimension_numbers = #tpu.dot_dimension_numbers<[1], [0], [0], [1], [0, 0, 1, 1], [], []>} : vector<152x32xf32>, vector<32x32xf32>, vector<152x32xf32> -> vector<152x32xf32>
    %c0_3 = arith.constant 0 : index
    %c0_4 = arith.constant 0 : index
    %3 = vector.load %arg5[%c0_3, %c0_4] : memref<1x32xf32, #tpu.memory_space<vmem>>, vector<1x32xf32>
    %4 = vector.broadcast %3 : vector<1x32xf32> to vector<152x32xf32>
    %5 = arith.addf %2, %4 : vector<152x32xf32>
    %c0_5 = arith.constant 0 : index
    %c0_6 = arith.constant 0 : index
    %6 = vector.load %arg2[%c0_5, %c0_6] : memref<152x32xf32, #tpu.memory_space<vmem>>, vector<152x32xf32>
    %c0_7 = arith.constant 0 : index
    %c0_8 = arith.constant 0 : index
    %7 = vector.load %arg6[%c0_7, %c0_8] : memref<32x32xf32, #tpu.memory_space<vmem>>, vector<32x32xf32>
    %cst_9 = arith.constant dense<0.000000e+00> : vector<152x32xf32>
    %8 = tpu.matmul %6, %7, %cst_9 {dimension_numbers = #tpu.dot_dimension_numbers<[1], [0], [0], [1], [0, 0, 1, 1], [], []>} : vector<152x32xf32>, vector<32x32xf32>, vector<152x32xf32> -> vector<152x32xf32>
    %c0_10 = arith.constant 0 : index
    %c0_11 = arith.constant 0 : index
    %9 = vector.load %arg7[%c0_10, %c0_11] : memref<1x32xf32, #tpu.memory_space<vmem>>, vector<1x32xf32>
    %10 = vector.broadcast %9 : vector<1x32xf32> to vector<152x32xf32>
    %11 = arith.addf %8, %10 : vector<152x32xf32>
    %c0_12 = arith.constant 0 : index
    %c0_13 = arith.constant 0 : index
    %12 = vector.load %arg3[%c0_12, %c0_13] : memref<152x16xf32, #tpu.memory_space<vmem>>, vector<152x16xf32>
    %c0_14 = arith.constant 0 : index
    %c0_15 = arith.constant 0 : index
    %13 = vector.load %arg8[%c0_14, %c0_15] : memref<16x32xf32, #tpu.memory_space<vmem>>, vector<16x32xf32>
    %cst_16 = arith.constant dense<0.000000e+00> : vector<152x32xf32>
    %14 = tpu.matmul %12, %13, %cst_16 {dimension_numbers = #tpu.dot_dimension_numbers<[1], [0], [0], [1], [0, 0, 1, 1], [], []>} : vector<152x16xf32>, vector<16x32xf32>, vector<152x32xf32> -> vector<152x32xf32>
    %c0_17 = arith.constant 0 : index
    %c0_18 = arith.constant 0 : index
    %15 = vector.load %arg9[%c0_17, %c0_18] : memref<1x32xf32, #tpu.memory_space<vmem>>, vector<1x32xf32>
    %16 = vector.broadcast %15 : vector<1x32xf32> to vector<152x32xf32>
    %17 = arith.addf %14, %16 : vector<152x32xf32>
    %18 = arith.mulf %5, %11 : vector<152x32xf32>
    %cst_19 = arith.constant dense<0.000000e+00> : vector<152xf32>
    %19 = vector.multi_reduction <add>, %18, %cst_19 [1] : vector<152x32xf32> to vector<152xf32>
    %20 = vector.shape_cast %19 : vector<152xf32> to vector<152x1xf32>
    %21 = arith.negf %20 : vector<152x1xf32>
    %22 = math.exp %21 : vector<152x1xf32>
    %cst_20 = arith.constant 1.000000e+00 : f32
    %23 = vector.broadcast %cst_20 : f32 to vector<152x1xf32>
    %24 = arith.addf %23, %22 : vector<152x1xf32>
    %25 = arith.divf %23, %24 : vector<152x1xf32>
    %26 = vector.broadcast %25 : vector<152x1xf32> to vector<152x32xf32>
    %27 = arith.mulf %26, %11 : vector<152x32xf32>
    %cst_21 = arith.constant 1.000000e+00 : f32
    %28 = vector.broadcast %cst_21 : f32 to vector<152x1xf32>
    %29 = arith.subf %28, %25 : vector<152x1xf32>
    %30 = vector.broadcast %29 : vector<152x1xf32> to vector<152x32xf32>
    %31 = arith.mulf %30, %5 : vector<152x32xf32>
    %32 = arith.addf %27, %31 : vector<152x32xf32>
    %33 = arith.addf %32, %17 : vector<152x32xf32>
    %c0_22 = arith.constant 0 : index
    %c0_23 = arith.constant 0 : index
    %34 = vector.load %arg10[%c0_22, %c0_23] : memref<32x32xf32, #tpu.memory_space<vmem>>, vector<32x32xf32>
    %cst_24 = arith.constant dense<0.000000e+00> : vector<152x32xf32>
    %35 = tpu.matmul %33, %34, %cst_24 {dimension_numbers = #tpu.dot_dimension_numbers<[1], [0], [0], [1], [0, 0, 1, 1], [], []>} : vector<152x32xf32>, vector<32x32xf32>, vector<152x32xf32> -> vector<152x32xf32>
    %c0_25 = arith.constant 0 : index
    %c0_26 = arith.constant 0 : index
    %36 = vector.load %arg11[%c0_25, %c0_26] : memref<1x32xf32, #tpu.memory_space<vmem>>, vector<1x32xf32>
    %37 = vector.broadcast %36 : vector<1x32xf32> to vector<152x32xf32>
    %38 = arith.addf %35, %37 : vector<152x32xf32>
    %cst_27 = arith.constant 0.000000e+00 : f32
    %39 = vector.broadcast %cst_27 : f32 to vector<152x32xf32>
    %40 = arith.maximumf %38, %39 : vector<152x32xf32>
    %c0_28 = arith.constant 0 : index
    %c0_29 = arith.constant 0 : index
    %41 = vector.load %arg12[%c0_28, %c0_29] : memref<32x8xf32, #tpu.memory_space<vmem>>, vector<32x8xf32>
    %cst_30 = arith.constant dense<0.000000e+00> : vector<152x8xf32>
    %42 = tpu.matmul %40, %41, %cst_30 {dimension_numbers = #tpu.dot_dimension_numbers<[1], [0], [0], [1], [0, 0, 1, 1], [], []>} : vector<152x32xf32>, vector<32x8xf32>, vector<152x8xf32> -> vector<152x8xf32>
    %c0_31 = arith.constant 0 : index
    %c0_32 = arith.constant 0 : index
    %43 = vector.load %arg13[%c0_31, %c0_32] : memref<1x8xf32, #tpu.memory_space<vmem>>, vector<1x8xf32>
    %44 = vector.broadcast %43 : vector<1x8xf32> to vector<152x8xf32>
    %45 = arith.addf %42, %44 : vector<152x8xf32>
    %c0_33 = arith.constant 0 : index
    %c0_34 = arith.constant 0 : index
    %46 = vector.load %arg14[%c0_33, %c0_34] : memref<152x8xf32, #tpu.memory_space<vmem>>, vector<152x8xf32>
    tpu.vector_store %arg14[%c0_33, %c0_34], %45 {strides = array<i32>} : memref<152x8xf32, #tpu.memory_space<vmem>>, vector<152x8xf32>,
    %c0_35 = arith.constant 0 : index
    %c0_36 = arith.constant 0 : index
    %47 = vector.load %arg15[%c0_35, %c0_36] : memref<152x1xf32, #tpu.memory_space<vmem>>, vector<152x1xf32>
    tpu.vector_store %arg15[%c0_35, %c0_36], %25 {strides = array<i32>} : memref<152x1xf32, #tpu.memory_space<vmem>>, vector<152x1xf32>,
    return
  }
  func.func @transform_0(%arg0: i32) -> (i32, i32) {
    %c0_i32 = arith.constant 0 : i32
    %c0_i32_0 = arith.constant 0 : i32
    return %arg0, %c0_i32 : i32, i32
  }
  func.func @transform_1(%arg0: i32) -> (i32, i32) {
    %c0_i32 = arith.constant 0 : i32
    %c0_i32_0 = arith.constant 0 : i32
    return %arg0, %c0_i32 : i32, i32
  }
  func.func @transform_2(%arg0: i32) -> (i32, i32) {
    %c0_i32 = arith.constant 0 : i32
    %c0_i32_0 = arith.constant 0 : i32
    return %arg0, %c0_i32 : i32, i32
  }
  func.func @transform_3(%arg0: i32) -> (i32, i32) {
    %c0_i32 = arith.constant 0 : i32
    %c0_i32_0 = arith.constant 0 : i32
    %c0_i32_1 = arith.constant 0 : i32
    return %c0_i32, %c0_i32_0 : i32, i32
  }
  func.func @transform_4(%arg0: i32) -> (i32, i32) {
    %c0_i32 = arith.constant 0 : i32
    %c0_i32_0 = arith.constant 0 : i32
    %c0_i32_1 = arith.constant 0 : i32
    return %c0_i32, %c0_i32_0 : i32, i32
  }
  func.func @transform_5(%arg0: i32) -> (i32, i32) {
    %c0_i32 = arith.constant 0 : i32
    %c0_i32_0 = arith.constant 0 : i32
    %c0_i32_1 = arith.constant 0 : i32
    return %c0_i32, %c0_i32_0 : i32, i32
  }
  func.func @transform_6(%arg0: i32) -> (i32, i32) {
    %c0_i32 = arith.constant 0 : i32
    %c0_i32_0 = arith.constant 0 : i32
    %c0_i32_1 = arith.constant 0 : i32
    return %c0_i32, %c0_i32_0 : i32, i32
  }
  func.func @transform_7(%arg0: i32) -> (i32, i32) {
    %c0_i32 = arith.constant 0 : i32
    %c0_i32_0 = arith.constant 0 : i32
    %c0_i32_1 = arith.constant 0 : i32
    return %c0_i32, %c0_i32_0 : i32, i32
  }
  func.func @transform_8(%arg0: i32) -> (i32, i32) {
    %c0_i32 = arith.constant 0 : i32
    %c0_i32_0 = arith.constant 0 : i32
    %c0_i32_1 = arith.constant 0 : i32
    return %c0_i32, %c0_i32_0 : i32, i32
  }
  func.func @transform_9(%arg0: i32) -> (i32, i32) {
    %c0_i32 = arith.constant 0 : i32
    %c0_i32_0 = arith.constant 0 : i32
    %c0_i32_1 = arith.constant 0 : i32
    return %c0_i32, %c0_i32_0 : i32, i32
  }
  func.func @transform_10(%arg0: i32) -> (i32, i32) {
    %c0_i32 = arith.constant 0 : i32
    %c0_i32_0 = arith.constant 0 : i32
    %c0_i32_1 = arith.constant 0 : i32
    return %c0_i32, %c0_i32_0 : i32, i32
  }
  func.func @transform_11(%arg0: i32) -> (i32, i32) {
    %c0_i32 = arith.constant 0 : i32
    %c0_i32_0 = arith.constant 0 : i32
    %c0_i32_1 = arith.constant 0 : i32
    return %c0_i32, %c0_i32_0 : i32, i32
  }
  func.func @transform_12(%arg0: i32) -> (i32, i32) {
    %c0_i32 = arith.constant 0 : i32
    %c0_i32_0 = arith.constant 0 : i32
    %c0_i32_1 = arith.constant 0 : i32
    return %c0_i32, %c0_i32_0 : i32, i32
  }
  func.func @transform_13(%arg0: i32) -> (i32, i32) {
    %c0_i32 = arith.constant 0 : i32
    %c0_i32_0 = arith.constant 0 : i32
    return %arg0, %c0_i32 : i32, i32
  }
  func.func @transform_14(%arg0: i32) -> (i32, i32) {
    %c0_i32 = arith.constant 0 : i32
    %c0_i32_0 = arith.constant 0 : i32
    return %arg0, %c0_i32 : i32, i32
  }
}

</mosaic_0001>

<bundles_post_ra>
// kernel: tpu_custom_call.1
= control target key start
LH: loop header
LB: loop body
LE: loop exit
PB: predicated region body
PF: predicated region fallthrough
CT: control target
= control target key end

     0   :  { %s2953_s29 = smov 0   ;;  %s3845_s0 = inlined_call_operand.vmem [shape: f32[300,32], index: 0, kind: input, shape index: {}]   ;;  %s3846_s1 = inlined_call_operand.vmem [shape: f32[300,32], index: 1, kind: input, shape index: {}]   ;;  %s3847_s2 = inlined_call_operand.vmem [shape: f32[300,16], index: 2, kind: input, shape index: {}]   ;;  %s3848_s3 = inlined_call_operand.vmem [shape: f32[32,32], index: 3, kind: input, shape index: {}]   ;;  %s3849_s4 = inlined_call_operand.vmem [shape: f32[1,32], index: 4, kind: input, shape index: {}]   ;;  %s3850_s5 = inlined_call_operand.vmem [shape: f32[32,32], index: 5, kind: input, shape index: {}]   ;;  %s3851_s6 = inlined_call_operand.vmem [shape: f32[1,32], index: 6, kind: input, shape index: {}]   ;;  %s3852_s7 = inlined_call_operand.vmem [shape: f32[16,32], index: 7, kind: input, shape index: {}]   ;;  %s3853_s8 = inlined_call_operand.vmem [shape: f32[1,32], index: 8, kind: input, shape index: {}]   ;;  %s3854_s9 = inlined_call_operand.vmem [shape: f32[32,32], index: 9, kind: input, shape index: {}]   ;;  %s3855_s10 = inlined_call_operand.vmem [shape: f32[1,32], index: 10, kind: input, shape index: {}]   ;;  %s3856_s11 = inlined_call_operand.vmem [shape: f32[32,8], index: 11, kind: input, shape index: {}]   ;;  %s3857_s12 = inlined_call_operand.vmem [shape: f32[1,8], index: 12, kind: input, shape index: {}]   ;;  %s3858_s13 = inlined_call_operand.vmem [shape: f32[300,8], index: 13, kind: output, shape index: {0}]   ;;  %s3859_s14 = inlined_call_operand.vmem [shape: f32[300,1], index: 14, kind: output, shape index: {1}]  }
   0x1 LB: > { %s2184_s30 = sadd.s32 4294967295, %s2873_s29   ;;  %p2188_p0 = scmp.ge.s32.totalorder %s2873_s29, 1  ;;  %s2873_s29 = sphi %s2953_s29, %s25_s29  }
   0x2   : > { %p438_p1 = scmp.lt.s32.totalorder %s2873_s29, 3 }
   0x4   : > { %p439_p2 = pnand %p2188_p0, %p438_p1 }
   0x6   : > { %442 = sbr.rel (%p439_p2) target bundleno = 955 (0x3bb), region = 72 }
   0xd   : > { %v548_v0 = vld [vmem:[%s3848_s3] sm:$0xff]  ;;  %v549_v1 = vld [vmem:[%s3848_s3 + $0x8] sm:$0xff]  ;;  %v550_v2 = vld [vmem:[%s3848_s3 + $0x10] sm:$0xff]  ;;  %v3862_v3 = vmov 0.0|0.0   ;;  %vm2876_vm0 = vmmov 0   ;;  %v3860_v6 = vmov 0.0  }
   0xe   : > { %2776 = vmatprep.subr.bf16.mxu1 %v3862_v3  ;;  %v2750_v4 = vpack.c.bf16 %v549_v1, %v548_v0  ;;  %v551_v5 = vld [vmem:[%s3848_s3 + $0x18] sm:$0xff]  ;;  %2466 = vmatprep.mubr.msk.f32.mxu1 %vm2876_vm0, %v3860_v6  ;;  %s499_s23 = smul.u32 19, %s2184_s30  ;;  %v796_v8 = vld [vmem:[%s3850_s5] sm:$0xff]  ;;  %v797_v9 = vld [vmem:[%s3850_s5 + $0x8] sm:$0xff]  ;;  %vm559_vm1 = vcmask 261120   ;;  %vm1052_vm2 = vcmask 130048  }
   0xf   : > { %2749 = vmatprep.subr.bf16.mxu0 %v3862_v3  ;;  %2436 = vmatprep.mubr.msk.f32.mxu0 %vm2876_vm0, %v3860_v6  ;;  %v2753_v7 = vpack.c.bf16 %v551_v5, %v550_v2  ;;  %v2756_v10 = vpack.c.bf16 %v797_v9, %v796_v8  ;;  %v798_v11 = vld [vmem:[%s3850_s5 + $0x10] sm:$0xff]  ;;  %v799_v12 = vld [vmem:[%s3850_s5 + $0x18] sm:$0xff]  ;;  %v1043_v14 = vld [vmem:[%s3852_s7] sm:$0xff]  ;;  %vm2050_vm3 = vcmask 7168   ;;  %vm2030_vm4 = vcmask 64512  }
  0x10   : > { %2778 = vmatpush3.bf16.msra.mxu1 %v2750_v4  ;;  %p500_p3 = scmp.lt.s32.totalorder %s499_s23, 37  ;;  %2751 = vmatpush3.bf16.msra.mxu0 %v2750_v4  ;;  %v1044_v15 = vld [vmem:[%s3852_s7 + $0x8] sm:$0xff]  ;;  %v2759_v17 = vpack.c.bf16 %v799_v12, %v798_v11  ;;  %v1555_v12 = vld [vmem:[%s3854_s9] sm:$0xff] }
  0x11   : > { %2777 = vmatprep.subr.bf16.mxu1 %v3862_v3  ;;  %2752 = vmatprep.subr.bf16.mxu0 %v3862_v3  ;;  %v2762_v19 = vpack.c.bf16 %v1044_v15, %v1043_v14  ;;  %v1557_v14 = vld [vmem:[%s3854_s9 + $0x10] sm:$0xff] }
  0x12   : > { %s3890_s23 = smov (!%p500_p3, %s499_s23), 37 }
  0x13   : > { %s2987_s28 = sshll.u32 %s3890_s23, 3 }
  0x14   : > { %2779 = vmatpush3.bf16.msra.mxu1 %v2753_v7  ;;  %2754 = vmatpush3.bf16.msra.mxu0 %v2753_v7  ;;  %s2993_s16 = scalar_lea.vmem %s3845_s0, %s2987_s28  ;;  %s3078_s27 = scalar_lea.vmem %s3846_s1, %s2987_s28 }
  0x15   : > { %2755 = vmatprep.subr.bf16.mxu1 %v3862_v3  ;;  %2761 = vmatprep.subr.bf16.mxu0 %v3862_v3  ;;  %v539_v13 = vld [vmem:[%s2993_s16 + $0x50] sm:$0xff]  ;;  %v540_v16 = vld [vmem:[%s2993_s16 + $0x58] sm:$0xff]  ;;  %v529_v18 = vld [vmem:[%s2993_s16] sm:$0xff]  ;;  %s3519_s25 = scalar_lea.vmem %s3859_s14, %s2987_s28  ;;  %s3783_s20 = scalar_lea.vmem %s3858_s13, %s2987_s28 }
  0x16   : > { %v530_v20 = vld [vmem:[%s2993_s16 + $0x8] sm:$0xff]  ;;  %v541_v21 = vld [vmem:[%s2993_s16 + $0x60] sm:$0xff]  ;;  %v531_v22 = vld [vmem:[%s2993_s16 + $0x10] sm:$0xff] }
  0x17   : > { %2467 = vmatmul.mubr.msk.f32.vlgmr.msra.gmra.mrb[0].mxu1 %vm559_vm1, %v539_v13  ;;  %2437 = vmatmul.mubr.msk.f32.vlgmr.msra.gmra.mrb[0].mxu0 %vm559_vm1, %v529_v18  ;;  %v542_v23 = vld [vmem:[%s2993_s16 + $0x68] sm:$0xff]  ;;  %v532_v24 = vld [vmem:[%s2993_s16 + $0x18] sm:$0xff]  ;;  %v543_v25 = vld [vmem:[%s2993_s16 + $0x70] sm:$0xff] }
  0x18   : > { %2757 = vmatpush3.bf16.msra.mxu1 %v2756_v10  ;;  %2469 = vmatprep.mubr.msk.f32.mxu1 %vm2876_vm0, %v3860_v6  ;;  %v533_v26 = vld [vmem:[%s2993_s16 + $0x20] sm:$0xff]  ;;  %v544_v27 = vld [vmem:[%s2993_s16 + $0x78] sm:$0xff]  ;;  %v534_v28 = vld [vmem:[%s2993_s16 + $0x28] sm:$0xff] }
  0x19   : > { %2758 = vmatprep.subr.bf16.mxu1 %v3862_v3  ;;  %2439 = vmatprep.mubr.msk.f32.mxu0 %vm2876_vm0, %v3860_v6  ;;  %v545_v29 = vld [vmem:[%s2993_s16 + $0x80] sm:$0xff]  ;;  %v535_v30 = vld [vmem:[%s2993_s16 + $0x30] sm:$0xff]  ;;  %v546_v31 = vld [vmem:[%s2993_s16 + $0x88] sm:$0xff] }
  0x1a   : > { %2763 = vmatpush3.bf16.msra.mxu0 %v2762_v19  ;;  %v536_v32 = vld [vmem:[%s2993_s16 + $0x38] sm:$0xff]  ;;  %v547_v33 = vld [vmem:[%s2993_s16 + $0x90] sm:$0xff]  ;;  %v537_v34 = vld [vmem:[%s2993_s16 + $0x40] sm:$0xff] }
  0x1b   : > { %2470 = vmatmul.mubr.msk.f32.gmra.mrb[2].mxu1 %vm559_vm1, %v540_v16  ;;  %2440 = vmatmul.mubr.msk.f32.gmra.mrb[2].mxu0 %vm559_vm1, %v530_v20  ;;  %v777_v35 = vld [vmem:[%s3078_s27] sm:$0xff]  ;;  %v538_v36 = vld [vmem:[%s2993_s16 + $0x48] sm:$0xff]  ;;  %v779_v38 = vld [vmem:[%s3078_s27 + $0x10] sm:$0xff]  ;;  %s3147_s16 = scalar_lea.vmem %s3847_s2, %s2987_s28 }
  0x1c   : > { %2472 = vmatprep.mubr.msk.f32.mxu1 %vm2876_vm0, %v3860_v6  ;;  %2760 = vmatpush3.bf16.msra.mxu1 %v2759_v17  ;;  %v778_v37 = vld [vmem:[%s3078_s27 + $0x8] sm:$0xff]  ;;  %v780_v39 = vld [vmem:[%s3078_s27 + $0x18] sm:$0xff]  ;;  %v781_v40 = vld [vmem:[%s3078_s27 + $0x20] sm:$0xff] }
  0x1d   : > { %2764 = vmatprep.subr.bf16.mxu1 %v3862_v3  ;;  %2770 = vmatprep.subr.bf16.mxu0 %v3862_v3  ;;  %v782_v41 = vld [vmem:[%s3078_s27 + $0x28] sm:$0xff]  ;;  %v783_v42 = vld [vmem:[%s3078_s27 + $0x30] sm:$0xff]  ;;  %v784_v43 = vld [vmem:[%s3078_s27 + $0x38] sm:$0xff] }
  0x1e   : > { %2442 = vmatprep.mubr.msk.f32.mxu0 %vm2876_vm0, %v3860_v6  ;;  %v785_v44 = vld [vmem:[%s3078_s27 + $0x40] sm:$0xff]  ;;  %v786_v45 = vld [vmem:[%s3078_s27 + $0x48] sm:$0xff]  ;;  %v787_v46 = vld [vmem:[%s3078_s27 + $0x50] sm:$0xff] }
  0x1f   : > { %2473 = vmatmul.mubr.msk.f32.gmra.mrb[4].mxu1 %vm559_vm1, %v541_v21  ;;  %2443 = vmatmul.mubr.msk.f32.gmra.mrb[4].mxu0 %vm559_vm1, %v531_v22  ;;  %v788_v47 = vld [vmem:[%s3078_s27 + $0x58] sm:$0xff]  ;;  %v789_v48 = vld [vmem:[%s3078_s27 + $0x60] sm:$0xff]  ;;  %v790_v50 = vld [vmem:[%s3078_s27 + $0x68] sm:$0xff] }
  0x20   : > { %2475 = vmatprep.mubr.msk.f32.mxu1 %vm2876_vm0, %v3860_v6  ;;  %2445 = vmatprep.mubr.msk.f32.mxu0 %vm2876_vm0, %v3860_v6  ;;  %v1024_v49 = vld [vmem:[%s3147_s16] sm:$0xff]  ;;  %v1025_v51 = vld [vmem:[%s3147_s16 + $0x8] sm:$0xff]  ;;  %v791_v52 = vld [vmem:[%s3078_s27 + $0x70] sm:$0xff] }
  0x21   : > { %v1026_v53 = vld [vmem:[%s3147_s16 + $0x10] sm:$0xff]  ;;  %v792_v54 = vld [vmem:[%s3078_s27 + $0x78] sm:$0xff]  ;;  %v793_v56 = vld [vmem:[%s3078_s27 + $0x80] sm:$0xff] }
  0x22   : > { %v1027_v55 = vld [vmem:[%s3147_s16 + $0x18] sm:$0xff]  ;;  %v1028_v57 = vld [vmem:[%s3147_s16 + $0x20] sm:$0xff]  ;;  %v794_v58 = vld [vmem:[%s3078_s27 + $0x88] sm:$0xff] }
  0x23   : > { %2476 = vmatmul.mubr.msk.f32.gmra.mrb[6].mxu1 %vm559_vm1, %v542_v23  ;;  %2446 = vmatmul.mubr.msk.f32.gmra.mrb[6].mxu0 %vm559_vm1, %v532_v24  ;;  %v1029_v59 = vld [vmem:[%s3147_s16 + $0x28] sm:$0xff]  ;;  %v795_v60 = vld [vmem:[%s3078_s27 + $0x90] sm:$0xff]  ;;  %v1031_v62 = vld [vmem:[%s3147_s16 + $0x38] sm:$0xff] }
  0x24   : > { %2478 = vmatprep.mubr.msk.f32.mxu1 %vm2876_vm0, %v3860_v6  ;;  %2448 = vmatprep.mubr.msk.f32.mxu0 %vm2876_vm0, %v3860_v6  ;;  %v1030_v61 = vld [vmem:[%s3147_s16 + $0x30] sm:$0xff]  ;;  %v1032_v63 = vld [vmem:[%s3147_s16 + $0x40] sm:$0xff]  ;;  %v1033_v0 = vld [vmem:[%s3147_s16 + $0x48] sm:$0xff] }
  0x25   : > { %v1034_v1 = vld [vmem:[%s3147_s16 + $0x50] sm:$0xff]  ;;  %v1035_v2 = vld [vmem:[%s3147_s16 + $0x58] sm:$0xff]  ;;  %v1036_v4 = vld [vmem:[%s3147_s16 + $0x60] sm:$0xff] }
  0x26   : > { %v1037_v5 = vld [vmem:[%s3147_s16 + $0x68] sm:$0xff]  ;;  %v1038_v7 = vld [vmem:[%s3147_s16 + $0x70] sm:$0xff]  ;;  %v1039_v8 = vld [vmem:[%s3147_s16 + $0x78] sm:$0xff] }
  0x27   : > { %2479 = vmatmul.mubr.msk.f32.gmra.mrb[8].mxu1 %vm559_vm1, %v543_v25  ;;  %2449 = vmatmul.mubr.msk.f32.gmra.mrb[8].mxu0 %vm559_vm1, %v533_v26  ;;  %v1040_v9 = vld [vmem:[%s3147_s16 + $0x80] sm:$0xff]  ;;  %v1041_v10 = vld [vmem:[%s3147_s16 + $0x88] sm:$0xff]  ;;  %v1042_v11 = vld [vmem:[%s3147_s16 + $0x90] sm:$0xff] }
  0x28   : > { %2481 = vmatprep.mubr.msk.f32.mxu1 %vm2876_vm0, %v3860_v6  ;;  %2451 = vmatprep.mubr.msk.f32.mxu0 %vm2876_vm0, %v3860_v6  ;;  %v1556_v13 = vld [vmem:[%s3854_s9 + $0x8] sm:$0xff]  ;;  %v1558_v16 = vld [vmem:[%s3854_s9 + $0x18] sm:$0xff] }
  0x29   : > { %v2765_v15 = vpack.c.bf16 %v1556_v13, %v1555_v12  ;;  %v2768_v17 = vpack.c.bf16 %v1558_v16, %v1557_v14 }
  0x2b   : > { %2482 = vmatmul.mubr.msk.f32.gmra.mrb[10].mxu1 %vm559_vm1, %v544_v27  ;;  %2452 = vmatmul.mubr.msk.f32.gmra.mrb[10].mxu0 %vm559_vm1, %v534_v28 }
  0x2c   : > { %2484 = vmatprep.mubr.msk.f32.mxu1 %vm2876_vm0, %v3860_v6  ;;  %2454 = vmatprep.mubr.msk.f32.mxu0 %vm2876_vm0, %v3860_v6 }
  0x2f   : > { %2485 = vmatmul.mubr.msk.f32.gmra.mrb[12].mxu1 %vm559_vm1, %v545_v29  ;;  %2455 = vmatmul.mubr.msk.f32.gmra.mrb[12].mxu0 %vm559_vm1, %v535_v30 }
  0x30   : > { %2487 = vmatprep.mubr.msk.f32.mxu1 %vm2876_vm0, %v3860_v6  ;;  %2457 = vmatprep.mubr.msk.f32.mxu0 %vm2876_vm0, %v3860_v6 }
  0x33   : > { %2488 = vmatmul.mubr.msk.f32.gmra.mrb[14].mxu1 %vm559_vm1, %v546_v31  ;;  %2458 = vmatmul.mubr.msk.f32.gmra.mrb[14].mxu0 %vm559_vm1, %v536_v32 }
  0x34   : > { %2490 = vmatprep.mubr.msk.f32.mxu1 %vm2876_vm0, %v3860_v6  ;;  %2460 = vmatprep.mubr.msk.f32.mxu0 %vm2876_vm0, %v3860_v6 }
  0x37   : > { %2491 = vmatmul.mubr.msk.f32.gmra.mrb[16].mxu1 %vm559_vm1, %v547_v33  ;;  %2461 = vmatmul.mubr.msk.f32.gmra.mrb[16].mxu0 %vm559_vm1, %v537_v34 }
  0x38   : > { %2501 = vmatprep.mubr.msk.f32.mxu1 %vm2876_vm0, %v3860_v6  ;;  %2463 = vmatprep.mubr.msk.f32.mxu0 %vm2876_vm0, %v3860_v6 }
  0x3b   : > { %2502 = vmatmul.mubr.msk.f32.vlgmr.msra.gmra.mrb[18].mxu1 %vm559_vm1, %v777_v35  ;;  %2464 = vmatmul.mubr.msk.f32.gmra.mrb[18].mxu0 %vm559_vm1, %v538_v36 }
  0x3c   : > { %2504 = vmatprep.mubr.msk.f32.mxu1 %vm2876_vm0, %v3860_v6  ;;  %2562 = vmatprep.mubr.msk.f32.mxu0 %vm2876_vm0, %v3860_v6 }
  0x3d   : > { %2766 = vmatpush3.bf16.msra.mxu1 %v2765_v15 }
  0x3e   : > { %2767 = vmatprep.subr.bf16.mxu1 %v3862_v3 }
  0x3f   : > { %2505 = vmatmul.mubr.msk.f32.gmra.mrb[20].mxu1 %vm559_vm1, %v778_v37  ;;  %2563 = vmatmul.mubr.msk.f32.vlgmr.msra.gmra.mrb[20].mxu0 %vm1052_vm2, %v1024_v49 }
  0x40   : > { %2507 = vmatprep.mubr.msk.f32.mxu1 %vm2876_vm0, %v3860_v6  ;;  %2565 = vmatprep.mubr.msk.f32.mxu0 %vm2876_vm0, %v3860_v6 }
  0x41   : > { %2769 = vmatpush3.bf16.msra.mxu1 %v2768_v17 }
  0x43   : > { %2508 = vmatmul.mubr.msk.f32.gmra.mrb[22].mxu1 %vm559_vm1, %v779_v38  ;;  %2566 = vmatmul.mubr.msk.f32.gmra.mrb[22].mxu0 %vm1052_vm2, %v1025_v51 }
  0x44   : > { %2510 = vmatprep.mubr.msk.f32.mxu1 %vm2876_vm0, %v3860_v6  ;;  %2568 = vmatprep.mubr.msk.f32.mxu0 %vm2876_vm0, %v3860_v6 }
  0x47   : > { %2511 = vmatmul.mubr.msk.f32.gmra.mrb[24].mxu1 %vm559_vm1, %v780_v39  ;;  %2569 = vmatmul.mubr.msk.f32.gmra.mrb[24].mxu0 %vm1052_vm2, %v1026_v53 }
  0x48   : > { %2513 = vmatprep.mubr.msk.f32.mxu1 %vm2876_vm0, %v3860_v6  ;;  %2571 = vmatprep.mubr.msk.f32.mxu0 %vm2876_vm0, %v3860_v6 }
  0x4b   : > { %2514 = vmatmul.mubr.msk.f32.gmra.mrb[26].mxu1 %vm559_vm1, %v781_v40  ;;  %2572 = vmatmul.mubr.msk.f32.gmra.mrb[26].mxu0 %vm1052_vm2, %v1027_v55 }
  0x4c   : > { %2516 = vmatprep.mubr.msk.f32.mxu1 %vm2876_vm0, %v3860_v6  ;;  %2574 = vmatprep.mubr.msk.f32.mxu0 %vm2876_vm0, %v3860_v6 }
  0x4f   : > { %2517 = vmatmul.mubr.msk.f32.gmra.mrb[28].mxu1 %vm559_vm1, %v782_v41  ;;  %2575 = vmatmul.mubr.msk.f32.gmra.mrb[28].mxu0 %vm1052_vm2, %v1028_v57  ;;  %v3280_v41 = vld [vmem:[%s3849_s4] ss:$0 sm:$0xff] }
  0x50   : > { %2519 = vmatprep.mubr.msk.f32.mxu1 %vm2876_vm0, %v3860_v6  ;;  %2577 = vmatprep.mubr.msk.f32.mxu0 %vm2876_vm0, %v3860_v6 }
  0x53   : > { %2520 = vmatmul.mubr.msk.f32.gmra.mrb[30].mxu1 %vm559_vm1, %v783_v42  ;;  %2578 = vmatmul.mubr.msk.f32.gmra.mrb[30].mxu0 %vm1052_vm2, %v1029_v59 }
  0x54   : > { %2522 = vmatprep.mubr.msk.f32.mxu1 %vm2876_vm0, %v3860_v6  ;;  %2580 = vmatprep.mubr.msk.f32.mxu0 %vm2876_vm0, %v3860_v6 }
  0x57   : > { %2523 = vmatmul.mubr.msk.f32.gmra.mrb[32].mxu1 %vm559_vm1, %v784_v43  ;;  %2581 = vmatmul.mubr.msk.f32.gmra.mrb[32].mxu0 %vm1052_vm2, %v1030_v61 }
  0x58   : > { %2525 = vmatprep.mubr.msk.f32.mxu1 %vm2876_vm0, %v3860_v6  ;;  %2583 = vmatprep.mubr.msk.f32.mxu0 %vm2876_vm0, %v3860_v6 }
  0x5b   : > { %2526 = vmatmul.mubr.msk.f32.gmra.mrb[34].mxu1 %vm559_vm1, %v785_v44  ;;  %2584 = vmatmul.mubr.msk.f32.gmra.mrb[34].mxu0 %vm1052_vm2, %v1031_v62 }
  0x5c   : > { %2528 = vmatprep.mubr.msk.f32.mxu1 %vm2876_vm0, %v3860_v6  ;;  %2586 = vmatprep.mubr.msk.f32.mxu0 %vm2876_vm0, %v3860_v6 }
  0x5f   : > { %2529 = vmatmul.mubr.msk.f32.gmra.mrb[36].mxu1 %vm559_vm1, %v786_v45  ;;  %2587 = vmatmul.mubr.msk.f32.gmra.mrb[36].mxu0 %vm1052_vm2, %v1032_v63 }
  0x60   : > { %2531 = vmatprep.mubr.msk.f32.mxu1 %vm2876_vm0, %v3860_v6  ;;  %2589 = vmatprep.mubr.msk.f32.mxu0 %vm2876_vm0, %v3860_v6 }
  0x63   : > { %2532 = vmatmul.mubr.msk.f32.gmra.mrb[38].mxu1 %vm559_vm1, %v787_v46  ;;  %2590 = vmatmul.mubr.msk.f32.gmra.mrb[38].mxu0 %vm1052_vm2, %v1033_v0 }
  0x64   : > { %2534 = vmatprep.mubr.msk.f32.mxu1 %vm2876_vm0, %v3860_v6  ;;  %2592 = vmatprep.mubr.msk.f32.mxu0 %vm2876_vm0, %v3860_v6 }
  0x67   : > { %2535 = vmatmul.mubr.msk.f32.gmra.mrb[40].mxu1 %vm559_vm1, %v788_v47  ;;  %2593 = vmatmul.mubr.msk.f32.gmra.mrb[40].mxu0 %vm1052_vm2, %v1034_v1 }
  0x68   : > { %2537 = vmatprep.mubr.msk.f32.mxu1 %vm2876_vm0, %v3860_v6  ;;  %2595 = vmatprep.mubr.msk.f32.mxu0 %vm2876_vm0, %v3860_v6 }
  0x6b   : > { %2538 = vmatmul.mubr.msk.f32.gmra.mrb[42].mxu1 %vm559_vm1, %v789_v48  ;;  %2596 = vmatmul.mubr.msk.f32.gmra.mrb[42].mxu0 %vm1052_vm2, %v1035_v2 }
  0x6c   : > { %2540 = vmatprep.mubr.msk.f32.mxu1 %vm2876_vm0, %v3860_v6  ;;  %2598 = vmatprep.mubr.msk.f32.mxu0 %vm2876_vm0, %v3860_v6 }
  0x6f   : > { %2541 = vmatmul.mubr.msk.f32.gmra.mrb[44].mxu1 %vm559_vm1, %v790_v50  ;;  %2599 = vmatmul.mubr.msk.f32.gmra.mrb[44].mxu0 %vm1052_vm2, %v1036_v4 }
  0x70   : > { %2543 = vmatprep.mubr.msk.f32.mxu1 %vm2876_vm0, %v3860_v6  ;;  %2601 = vmatprep.mubr.msk.f32.mxu0 %vm2876_vm0, %v3860_v6 }
  0x73   : > { %2544 = vmatmul.mubr.msk.f32.gmra.mrb[46].mxu1 %vm559_vm1, %v791_v52  ;;  %2602 = vmatmul.mubr.msk.f32.gmra.mrb[46].mxu0 %vm1052_vm2, %v1037_v5 }
  0x74   : > { %2546 = vmatprep.mubr.msk.f32.mxu1 %vm2876_vm0, %v3860_v6  ;;  %2604 = vmatprep.mubr.msk.f32.mxu0 %vm2876_vm0, %v3860_v6 }
  0x77   : > { %2547 = vmatmul.mubr.msk.f32.gmra.mrb[48].mxu1 %vm559_vm1, %v792_v54  ;;  %2605 = vmatmul.mubr.msk.f32.gmra.mrb[48].mxu0 %vm1052_vm2, %v1038_v7 }
  0x78   : > { %2549 = vmatprep.mubr.msk.f32.mxu1 %vm2876_vm0, %v3860_v6  ;;  %2607 = vmatprep.mubr.msk.f32.mxu0 %vm2876_vm0, %v3860_v6 }
  0x7b   : > { %2550 = vmatmul.mubr.msk.f32.gmra.mrb[50].mxu1 %vm559_vm1, %v793_v56  ;;  %2608 = vmatmul.mubr.msk.f32.gmra.mrb[50].mxu0 %vm1052_vm2, %v1039_v8  ;;  %v3294_v56 = vld [vmem:[%s3851_s6] ss:$0 sm:$0xff] }
  0x7c   : > { %2552 = vmatprep.mubr.msk.f32.mxu1 %vm2876_vm0, %v3860_v6  ;;  %2610 = vmatprep.mubr.msk.f32.mxu0 %vm2876_vm0, %v3860_v6 }
  0x7f   : > { %2553 = vmatmul.mubr.msk.f32.gmra.mrb[52].mxu1 %vm559_vm1, %v794_v58  ;;  %2611 = vmatmul.mubr.msk.f32.gmra.mrb[52].mxu0 %vm1052_vm2, %v1040_v9 }
  0x80   : > { %2555 = vmatprep.mubr.msk.f32.mxu1 %vm2876_vm0, %v3860_v6  ;;  %2613 = vmatprep.mubr.msk.f32.mxu0 %vm2876_vm0, %v3860_v6 }
  0x83   : > { %2556 = vmatmul.mubr.msk.f32.gmra.mrb[54].mxu1 %vm559_vm1, %v795_v60  ;;  %2614 = vmatmul.mubr.msk.f32.gmra.mrb[54].mxu0 %vm1052_vm2, %v1041_v10 }
  0x84   : > { %2627 = vmatprep.mubr.msk.f32.mxu1 %vm2876_vm0, %v3860_v6  ;;  %2616 = vmatprep.mubr.msk.f32.mxu0 %vm2876_vm0, %v3860_v6 }
  0x87   : > { %2617 = vmatmul.mubr.msk.f32.gmra.mrb[56].mxu0 %vm1052_vm2, %v1042_v11 }
  0x88   : > { %2692 = vmatprep.mubr.msk.f32.mxu0 %vm2876_vm0, %v3860_v6 }
  0xea   : > { %v3265_v18 = vpop.f32.mrb[0].mxu1  ;;  %v683_v20 = vpop.f32.mrb[0].mxu0 }
  0xeb   : > { %v2468_v19 = vpop.f32.mrb[1].mxu1  ;;  %v2438_v22 = vpop.f32.mrb[1].mxu0  ;;  %v3297_v57 = vadd.f32 %v3280_v41, %v683_v20 }
  0xee   : > { %v3267_v21 = vpop.f32.mrb[2].mxu1  ;;  %v688_v24 = vpop.f32.mrb[2].mxu0 }
  0xef   : > { %v2471_v23 = vpop.f32.mrb[3].mxu1  ;;  %v2441_v26 = vpop.f32.mrb[3].mxu0  ;;  %v3303_v63 = vadd.f32 %v3280_v41, %v688_v24 }
  0xf2   : > { %v3269_v25 = vpop.f32.mrb[4].mxu1  ;;  %v693_v28 = vpop.f32.mrb[4].mxu0 }
  0xf3   : > { %v2474_v27 = vpop.f32.mrb[5].mxu1  ;;  %v2444_v30 = vpop.f32.mrb[5].mxu0  ;;  %v3312_v9 = vadd.f32 %v3280_v41, %v693_v28 }
  0xf6   : > { %v3271_v29 = vpop.f32.mrb[6].mxu1  ;;  %v698_v32 = vpop.f32.mrb[6].mxu0 }
  0xf7   : > { %v2477_v31 = vpop.f32.mrb[7].mxu1  ;;  %v2447_v34 = vpop.f32.mrb[7].mxu0  ;;  %v3321_v15 = vadd.f32 %v3280_v41, %v698_v32 }
  0xfa   : > { %v3273_v33 = vpop.f32.mrb[8].mxu1  ;;  %v703_v36 = vpop.f32.mrb[8].mxu0 }
  0xfb   : > { %v2480_v35 = vpop.f32.mrb[9].mxu1  ;;  %v2450_v38 = vpop.f32.mrb[9].mxu0  ;;  %v3330_v23 = vadd.f32 %v3280_v41, %v703_v36 }
  0xfe   : > { %v3275_v37 = vpop.f32.mrb[10].mxu1  ;;  %v708_v40 = vpop.f32.mrb[10].mxu0 }
  0xff   : > { %v2483_v39 = vpop.f32.mrb[11].mxu1  ;;  %v2453_v43 = vpop.f32.mrb[11].mxu0  ;;  %v3339_v31 = vadd.f32 %v3280_v41, %v708_v40 }
 0x102   : > { %v763_v42 = vpop.f32.mrb[12].mxu1  ;;  %v713_v46 = vpop.f32.mrb[12].mxu0 }
 0x103   : > { %v3283_v44 = vadd.f32 %v3280_v41, %v763_v42  ;;  %v2486_v45 = vpop.f32.mrb[13].mxu1  ;;  %v2456_v48 = vpop.f32.mrb[13].mxu0  ;;  %v3348_v39 = vadd.f32 %v3280_v41, %v713_v46 }
 0x105   : > { %3869 = vst [vmem:[#allocation2_spill] sm:$0xff] %v3283_v44 }
 0x106   : > { %v768_v47 = vpop.f32.mrb[14].mxu1  ;;  %v718_v51 = vpop.f32.mrb[14].mxu0 }
 0x107   : > { %v3286_v49 = vadd.f32 %v3280_v41, %v768_v47  ;;  %v2489_v50 = vpop.f32.mrb[15].mxu1  ;;  %v2459_v53 = vpop.f32.mrb[15].mxu0  ;;  %v3357_v48 = vadd.f32 %v3280_v41, %v718_v51 }
 0x109   : > { %3870 = vst [vmem:[#allocation3_spill] sm:$0xff] %v3286_v49 }
 0x10a   : > { %v773_v52 = vpop.f32.mrb[16].mxu1  ;;  %v723_v58 = vpop.f32.mrb[16].mxu0 }
 0x10b   : > { %v3289_v54 = vadd.f32 %v3280_v41, %v773_v52  ;;  %v2492_v55 = vpop.f32.mrb[17].mxu1  ;;  %v2462_v60 = vpop.f32.mrb[17].mxu0 }
 0x10d   : > { %3871 = vst [vmem:[#allocation4_spill] sm:$0xff] %v3289_v54 }
 0x10e   : > { %v930_v59 = vpop.f32.mrb[18].mxu1  ;;  %v728_v1 = vpop.f32.mrb[18].mxu0 }
 0x10f   : > { %v3300_v61 = vadd.f32 %v3294_v56, %v930_v59  ;;  %v2503_v62 = vpop.f32.mrb[19].mxu1  ;;  %v2465_v4 = vpop.f32.mrb[19].mxu0  ;;  %v3366_v59 = vadd.f32 %v3280_v41, %v723_v58 }
 0x110   : > { %v3375_v4 = vadd.f32 %v3280_v41, %v728_v1 }
 0x111   : > { %v1270_v0 = vmul.f32 %v3300_v61, %v3297_v57 }
 0x112   : > { %v935_v2 = vpop.f32.mrb[20].mxu1 }
 0x113   : > { %v3308_v5 = vadd.f32 %v3294_v56, %v935_v2  ;;  %v2506_v7 = vpop.f32.mrb[21].mxu1  ;;  %v1289_v8 = vsel %vm559_vm1, %v1270_v0, 0.0 }
 0x114   : > { %1290 = vadd.xlane.f32.xlu0 %v1289_v8 }
 0x115   : > { %v1271_v10 = vmul.f32 %v3308_v5, %v3303_v63 }
 0x116   : > { %v940_v11 = vpop.f32.mrb[22].mxu1 }
 0x117   : > { %v3317_v12 = vadd.f32 %v3294_v56, %v940_v11  ;;  %v2509_v13 = vpop.f32.mrb[23].mxu1  ;;  %v1292_v14 = vsel %vm559_vm1, %v1271_v10, 0.0 }
 0x118   : > { %1293 = vadd.xlane.f32.xlu0 %v1292_v14 }
 0x119   : > { %v1272_v16 = vmul.f32 %v3317_v12, %v3312_v9 }
 0x11a   : > { %v945_v17 = vpop.f32.mrb[24].mxu1 }
 0x11b   : > { %v3326_v19 = vadd.f32 %v3294_v56, %v945_v17  ;;  %v2512_v20 = vpop.f32.mrb[25].mxu1  ;;  %v1295_v22 = vsel %vm559_vm1, %v1272_v16, 0.0  ;;  %v3387_v16 = vadd.f32 %v3280_v41, %v3265_v18 }
 0x11c   : > { %1296 = vadd.xlane.f32.xlu1 %v1295_v22 }
 0x11d   : > { %v1273_v24 = vmul.f32 %v3326_v19, %v3321_v15 }
 0x11e   : > { %v950_v26 = vpop.f32.mrb[26].mxu1 }
 0x11f   : > { %v3335_v27 = vadd.f32 %v3294_v56, %v950_v26  ;;  %v2515_v28 = vpop.f32.mrb[27].mxu1  ;;  %v1298_v30 = vsel %vm559_vm1, %v1273_v24, 0.0  ;;  %v3397_v26 = vadd.f32 %v3280_v41, %v3267_v21 }
 0x120   : > { %1299 = vadd.xlane.f32.xlu1 %v1298_v30 }
 0x121   : > { %v1274_v32 = vmul.f32 %v3335_v27, %v3330_v23 }
 0x122   : > { %v955_v34 = vpop.f32.mrb[28].mxu1 }
 0x123   : > { %v3344_v35 = vadd.f32 %v3294_v56, %v955_v34  ;;  %v2518_v36 = vpop.f32.mrb[29].mxu1  ;;  %v1301_v38 = vsel %vm559_vm1, %v1274_v32, 0.0 }
 0x124   : > { %1302 = vadd.xlane.f32.xlu0 %v1301_v38  ;;  %v3405_v36 = vpop.f32.mrb[20].mxu0  ;;  %v3409_v38 = vadd.f32 %v3280_v41, %v3269_v25 }
 0x125   : > { %v1275_v42 = vmul.f32 %v3344_v35, %v3339_v31 }
 0x126   : > { %v960_v43 = vpop.f32.mrb[30].mxu1 }
 0x127   : > { %v3353_v40 = vadd.f32 %v3294_v56, %v960_v43  ;;  %v2521_v45 = vpop.f32.mrb[31].mxu1  ;;  %v1304_v47 = vsel %vm559_vm1, %v1275_v42, 0.0 }
 0x128   : > { %1305 = vadd.xlane.f32.xlu1 %v1304_v47  ;;  %v2564_v45 = vpop.f32.mrb[21].mxu0 }
 0x129   : > { %v1276_v50 = vmul.f32 %v3353_v40, %v3348_v39 }
 0x12a   : > { %v965_v52 = vpop.f32.mrb[32].mxu1 }
 0x12b   : > { %v3362_v46 = vadd.f32 %v3294_v56, %v965_v52  ;;  %v2524_v53 = vpop.f32.mrb[33].mxu1  ;;  %v1307_v55 = vsel %vm559_vm1, %v1276_v50, 0.0  ;;  %v3417_v52 = vpop.f32.mrb[22].mxu0 }
 0x12c   : > { %1308 = vadd.xlane.f32.xlu0 %v1307_v55  ;;  %v3421_v53 = vadd.f32 %v3280_v41, %v3271_v29 }
 0x12d   : > { %v1277_v60 = vmul.f32 %v3362_v46, %v3357_v48 }
 0x12e   : > { %v970_v62 = vpop.f32.mrb[34].mxu1 }
 0x12f   : > { %v3371_v51 = vadd.f32 %v3294_v56, %v970_v62  ;;  %v2527_v0 = vpop.f32.mrb[35].mxu1  ;;  %v1310_v2 = vsel %vm559_vm1, %v1277_v60, 0.0  ;;  %v2567_v62 = vpop.f32.mrb[23].mxu0 }
 0x130   : > { %1311 = vadd.xlane.f32.xlu1 %v1310_v2 }
 0x131   : > { %v1278_v7 = vmul.f32 %v3371_v51, %v3366_v59 }
 0x132   : > { %v975_v8 = vpop.f32.mrb[36].mxu1 }
 0x133   : > { %v3380_v58 = vadd.f32 %v3294_v56, %v975_v8  ;;  %v2530_v10 = vpop.f32.mrb[37].mxu1  ;;  %v1313_v11 = vsel %vm559_vm1, %v1278_v7, 0.0  ;;  %v3429_v7 = vpop.f32.mrb[24].mxu0  ;;  %v3433_v8 = vadd.f32 %v3280_v41, %v3273_v33 }
 0x134   : > { %1314 = vadd.xlane.f32.xlu0 %v1313_v11 }
 0x135   : > { %v1279_v13 = vmul.f32 %v3380_v58, %v3375_v4 }
 0x136   : > { %v980_v14 = vpop.f32.mrb[38].mxu1 }
 0x137   : > { %v3390_v1 = vadd.f32 %v3294_v56, %v980_v14  ;;  %v2533_v17 = vpop.f32.mrb[39].mxu1  ;;  %v1316_v20 = vsel %vm559_vm1, %v1279_v13, 0.0  ;;  %v2570_v13 = vpop.f32.mrb[25].mxu0 }
 0x138   : > { %1317 = vadd.xlane.f32.xlu1 %v1316_v20  ;;  %v3441_v20 = vpop.f32.mrb[26].mxu0 }
 0x139   : > { %v1280_v22 = vmul.f32 %v3390_v1, %v3387_v16 }
 0x13a   : > { %v985_v24 = vpop.f32.mrb[40].mxu1 }
 0x13b   : > { %v3400_v28 = vadd.f32 %v3294_v56, %v985_v24  ;;  %v2536_v18 = vpop.f32.mrb[41].mxu1  ;;  %v1319_v30 = vsel %vm559_vm1, %v1280_v22, 0.0  ;;  %v3445_v22 = vadd.f32 %v3280_v41, %v3275_v37 }
 0x13c   : > { %1320 = vadd.xlane.f32.xlu0 %v1319_v30  ;;  %v2573_v30 = vpop.f32.mrb[27].mxu0 }
 0x13d   : > { %v1281_v32 = vmul.f32 %v3400_v28, %v3397_v26 }
 0x13e   : > { %v990_v34 = vpop.f32.mrb[42].mxu1 }
 0x13f   : > { %v3412_v21 = vadd.f32 %v3294_v56, %v990_v34  ;;  %v2539_v42 = vpop.f32.mrb[43].mxu1  ;;  %v1322_v43 = vsel %vm559_vm1, %v1281_v32, 0.0 }
 0x140   : > { %1323 = vadd.xlane.f32.xlu1 %v1322_v43  ;;  %v3453_v42 = vpop.f32.mrb[28].mxu0 }
 0x141   : > { %v1282_v47 = vmul.f32 %v3412_v21, %v3409_v38  ;;  %v2576_v41 = vpop.f32.mrb[29].mxu0 }
 0x142   : > { %v995_v50 = vpop.f32.mrb[44].mxu1 }
 0x143   : > { %v3424_v25 = vadd.f32 %v3294_v56, %v995_v50  ;;  %v2542_v55 = vpop.f32.mrb[45].mxu1  ;;  %v1325_v60 = vsel %vm559_vm1, %v1282_v47, 0.0 }
 0x144   : > { %1326 = vadd.xlane.f32.xlu0 %v1325_v60  ;;  %v3461_v55 = vpop.f32.mrb[30].mxu0 }
 0x145   : > { %v1283_v0 = vmul.f32 %v3424_v25, %v3421_v53 }
 0x146   : > { %v1000_v2 = vpop.f32.mrb[46].mxu1 }
 0x147   : > { %v3436_v29 = vadd.f32 %v3294_v56, %v1000_v2  ;;  %v2545_v10 = vpop.f32.mrb[47].mxu1  ;;  %v1328_v11 = vsel %vm559_vm1, %v1283_v0, 0.0  ;;  %v2579_v2 = vpop.f32.mrb[31].mxu0 }
 0x148   : > { %1329 = vadd.xlane.f32.xlu1 %v1328_v11  ;;  %v3469_v13 = vpop.f32.mrb[32].mxu0 }
 0x149   : > { %v1284_v14 = vmul.f32 %v3436_v29, %v3433_v8 }
 0x14a   : > { %v1005_v17 = vpop.f32.mrb[48].mxu1 }
 0x14b   : > { %v3448_v33 = vadd.f32 %v3294_v56, %v1005_v17  ;;  %v2548_v24 = vpop.f32.mrb[49].mxu1  ;;  %v1331_v18 = vsel %vm559_vm1, %v1284_v14, 0.0 }
 0x14c   : > { %1332 = vadd.xlane.f32.xlu0 %v1331_v18  ;;  %v2582_v18 = vpop.f32.mrb[33].mxu0 }
 0x14d   : > { %v1285_v32 = vmul.f32 %v3448_v33, %v3445_v22 }
 0x14e   : > { %v1010_v34 = vpop.f32.mrb[50].mxu1 }
 0x14f   : > { %v3456_v43 = vadd.f32 %v3294_v56, %v1010_v34  ;;  %v2551_v45 = vpop.f32.mrb[51].mxu1  ;;  %v1334_v37 = vsel %vm559_vm1, %v1285_v32, 0.0  ;;  %v3477_v32 = vpop.f32.mrb[34].mxu0 }
 0x150   : > { %1335 = vadd.xlane.f32.xlu1 %v1334_v37  ;;  %v2585_v45 = vpop.f32.mrb[35].mxu0 }
 0x151   : > { %3872 = vst [vmem:[#allocation5_spill] sm:$0xff] %v3456_v43  ;;  %v1286_v47 = vmul.f32 %v3456_v43, %v3283_v44  ;;  %v3480_v37 = vpop.f32.mrb[36].mxu0 }
 0x152   : > { %v1015_v50 = vpop.f32.mrb[52].mxu1  ;;  %v2588_v41 = vpop.f32.mrb[37].mxu0 }
 0x153   : > { %v3464_v60 = vadd.f32 %v3294_v56, %v1015_v50  ;;  %v2554_v62 = vpop.f32.mrb[53].mxu1  ;;  %v1337_v0 = vsel %vm559_vm1, %v1286_v47, 0.0  ;;  %v3482_v47 = vpop.f32.mrb[38].mxu0 }
 0x154   : > { %1338 = vadd.xlane.f32.xlu0 %v1337_v0 }
 0x155   : > { %3873 = vst [vmem:[#allocation6_spill] sm:$0xff] %v3464_v60  ;;  %v1287_v10 = vmul.f32 %v3464_v60, %v3286_v49 }
 0x156   : > { %v1020_v11 = vpop.f32.mrb[54].mxu1 }
 0x157   : > { %v3472_v14 = vadd.f32 %v3294_v56, %v1020_v11  ;;  %v2557_v17 = vpop.f32.mrb[55].mxu1  ;;  %v1340_v24 = vsel %vm559_vm1, %v1287_v10, 0.0  ;;  %v2591_v56 = vpop.f32.mrb[39].mxu0 }
 0x158   : > { %1341 = vadd.xlane.f32.xlu1 %v1340_v24  ;;  %v3484_v50 = vpop.f32.mrb[40].mxu0 }
 0x159   : > { %3874 = vst [vmem:[#allocation7_spill] sm:$0xff] %v3472_v14  ;;  %v1288_v30 = vmul.f32 %v3472_v14, %v3289_v54  ;;  %v2594_v62 = vpop.f32.mrb[41].mxu0 }
 0x15a   : > { %v3486_v0 = vpop.f32.mrb[42].mxu0 }
 0x15b   : > { %v1343_v34 = vsel %vm559_vm1, %v1288_v30, 0.0  ;;  %v2597_v2 = vpop.f32.mrb[43].mxu0 }
 0x15c   : > { %1344 = vadd.xlane.f32.xlu0 %v1343_v34  ;;  %v3488_v10 = vpop.f32.mrb[44].mxu0 }
 0x15d   : > { %v2600_v11 = vpop.f32.mrb[45].mxu0 }
 0x15e   : > { %v3490_v17 = vpop.f32.mrb[46].mxu0  ;;  %v1802_v11 = vld [vmem:[%s3856_s11] sm:$0xff] }
 0x15f   : > { %v2603_v24 = vpop.f32.mrb[47].mxu0 }
 0x160   : > { %v3492_v18 = vpop.f32.mrb[48].mxu0  ;;  %v1803_v24 = vld [vmem:[%s3856_s11 + $0x8] sm:$0xff] }
 0x161   : > { %v2606_v30 = vpop.f32.mrb[49].mxu0 }
 0x162   : > { %v3494_v34 = vpop.f32.mrb[50].mxu0  ;;  %v1804_v30 = vld [vmem:[%s3856_s11 + $0x10] sm:$0xff] }
 0x163   : > { %v2609_v45 = vpop.f32.mrb[51].mxu0 }
 0x164   : > { %v3496_v41 = vpop.f32.mrb[52].mxu0  ;;  %v2771_v45 = vpack.c.bf16 %v1803_v24, %v1802_v11 }
 0x165   : > { %3875 = vst [vmem:[#allocation8_spill] sm:$0xff] %v3496_v41  ;;  %v2612_v56 = vpop.f32.mrb[53].mxu0 }
 0x166   : > { %v3498_v6 = vpop.f32.mrb[54].mxu0  ;;  %v1805_v56 = vld [vmem:[%s3856_s11 + $0x18] sm:$0xff]  ;;  %2772 = vmatpush3.bf16.msra.mxu0 %v2771_v45 }
 0x167   : > { %3876 = vst [vmem:[#allocation9_spill] sm:$0xff] %v3498_v6  ;;  %v2615_v62 = vpop.f32.mrb[55].mxu0 }
 0x168   : > { %v3500_v3 = vpop.f32.mrb[56].mxu0  ;;  %v2774_v62 = vpack.c.bf16 %v1805_v56, %v1804_v30 }
 0x169   : > { %3877 = vst [vmem:[#allocation10_spill] sm:$0xff] %v3500_v3  ;;  %v2618_v2 = vpop.f32.mrb[57].mxu0 }
 0x16a   : > { %v3878_v2 = vmov 0.0|0.0  }
 0x16b   : > { %2773 = vmatprep.subr.bf16.mxu0 %v3878_v2 }
 0x16c   : > { %2775 = vmatpush3.bf16.msra.mxu0 %v2774_v62 }
 0x1a1   : > { %v1291_v54 = vpop.xlane.xlu0 %1290 }
 0x1a2   : > { %v2254_v14 = vmul.f32 -1.442695, %v1291_v54 }
 0x1a4   : > { %2791 = vpow2.f32 %v2254_v14 }
 0x1a5   : > { %v1294_v3 = vpop.xlane.xlu0 %1293 }
 0x1a6   : > { %v2255_v49 = vmul.f32 -1.442695, %v1294_v3 }
 0x1a8   : > { %2793 = vpow2.f32 %v2255_v49 }
 0x1a9   : > { %v1297_v60 = vpop.xlane.xlu1 %1296 }
 0x1aa   : > { %v2256_v6 = vmul.f32 -1.442695, %v1297_v60 }
 0x1ac   : > { %2795 = vpow2.f32 %v2256_v6 }
 0x1ad   : > { %v1300_v44 = vpop.xlane.xlu1 %1299 }
 0x1ae   : > { %v2792_v11 = vpop.eup %2791  ;;  %v2257_v24 = vmul.f32 -1.442695, %v1300_v44 }
 0x1af   : > { %v1403_v43 = vadd.f32 1.0, %v2792_v11  ;;  %v3524_v11 = vld [vmem:[%s3853_s8] ss:$0 sm:$0xff] }
 0x1b0   : > { %2797 = vpow2.f32 %v2257_v24 }
 0x1b1   : > { %2799 = vrcp.f32 %v1403_v43  ;;  %v1303_v30 = vpop.xlane.xlu0 %1302 }
 0x1b2   : > { %v2794_v45 = vpop.eup %2793  ;;  %v2258_v56 = vmul.f32 -1.442695, %v1303_v30 }
 0x1b3   : > { %v1404_v62 = vadd.f32 1.0, %v2794_v45 }
 0x1b4   : > { %2801 = vpow2.f32 %v2258_v56 }
 0x1b5   : > { %2803 = vrcp.f32 %v1404_v62  ;;  %v1306_v54 = vpop.xlane.xlu1 %1305  ;;  %v1177_v62 = vadd.f32 %v3524_v11, %v3405_v36 }
 0x1b6   : > { %v2796_v14 = vpop.eup %2795  ;;  %v2259_v3 = vmul.f32 -1.442695, %v1306_v54 }
 0x1b7   : > { %v1405_v49 = vadd.f32 1.0, %v2796_v14 }
 0x1b8   : > { %2805 = vpow2.f32 %v2259_v3 }
 0x1b9   : > { %2807 = vrcp.f32 %v1405_v49  ;;  %v1309_v6 = vpop.xlane.xlu0 %1308 }
 0x1ba   : > { %v2798_v44 = vpop.eup %2797  ;;  %v2260_v43 = vmul.f32 -1.442695, %v1309_v6 }
 0x1bb   : > { %v2800_v60 = vpop.eup %2799  ;;  %v1406_v2 = vadd.f32 1.0, %v2798_v44 }
 0x1bc   : > { %2051 = vst.msk [vmem:[%s3519_s25] sm:$0xff] %vm2050_vm3, %v2800_v60  ;;  %2809 = vpow2.f32 %v2260_v43  ;;  %v1479_v24 = vsub.f32 1.0, %v2800_v60  ;;  %v1460_v54 = vmul.f32 %v2800_v60, %v3300_v61 }
 0x1bd   : > { %2811 = vrcp.f32 %v1406_v2  ;;  %v1312_v30 = vpop.xlane.xlu1 %1311  ;;  %v1182_v2 = vadd.f32 %v3524_v11, %v3417_v52  ;;  %v1187_v52 = vadd.f32 %v3524_v11, %v3429_v7 }
 0x1be   : > { %v2802_v45 = vpop.eup %2801  ;;  %v2261_v56 = vmul.f32 -1.442695, %v1312_v30  ;;  %v1498_v14 = vmul.f32 %v1479_v24, %v3297_v57 }
 0x1bf   : > { %v2804_v3 = vpop.eup %2803  ;;  %v1407_v49 = vadd.f32 1.0, %v2802_v45 }
 0x1c0   : > { %2052 = vst.msk [vmem:[%s3519_s25 + $0x8] sm:$0xff] %vm2050_vm3, %v2804_v3  ;;  %2813 = vpow2.f32 %v2261_v56  ;;  %v1517_v6 = vadd.f32 %v1498_v14, %v1460_v54  ;;  %v1480_v44 = vsub.f32 1.0, %v2804_v3  ;;  %v1461_v61 = vmul.f32 %v2804_v3, %v3308_v5 }
 0x1c1   : > { %2815 = vrcp.f32 %v1407_v49  ;;  %v1315_v43 = vpop.xlane.xlu0 %1314 }
 0x1c2   : > { %v2806_v30 = vpop.eup %2805  ;;  %v1536_v41 = vadd.f32 %v1517_v6, %v1177_v62  ;;  %v2262_v36 = vmul.f32 -1.442695, %v1315_v43  ;;  %v1499_v57 = vmul.f32 %v1480_v44, %v3303_v63  ;;  %v3879_v62 = vmov 0.0  }
 0x1c3   : > { %v2808_v60 = vpop.eup %2807  ;;  %v1408_v24 = vadd.f32 1.0, %v2806_v30 }
 0x1c4   : > { %2053 = vst.msk [vmem:[%s3519_s25 + $0x10] sm:$0xff] %vm2050_vm3, %v2808_v60  ;;  %2817 = vpow2.f32 %v2262_v36  ;;  %v1518_v45 = vadd.f32 %v1499_v57, %v1461_v61  ;;  %2628 = vmatmul.mubr.msk.f32.vlgmr.msra.gmra.mrb[56].mxu1 %vm559_vm1, %v1536_v41  ;;  %v1481_v56 = vsub.f32 1.0, %v2808_v60  ;;  %v1462_v3 = vmul.f32 %v2808_v60, %v3317_v12 }
 0x1c5   : > { %2819 = vrcp.f32 %v1408_v24  ;;  %v1318_v54 = vpop.xlane.xlu1 %1317  ;;  %2630 = vmatprep.mubr.msk.f32.mxu1 %vm2876_vm0, %v3879_v62 }
 0x1c6   : > { %v2810_v5 = vpop.eup %2809  ;;  %v1537_v63 = vadd.f32 %v1518_v45, %v1182_v2  ;;  %v2263_v14 = vmul.f32 -1.442695, %v1318_v54  ;;  %v1500_v49 = vmul.f32 %v1481_v56, %v3312_v9  ;;  %v1192_v2 = vadd.f32 %v3524_v11, %v3441_v20 }
 0x1c7   : > { %v2812_v6 = vpop.eup %2811  ;;  %v1409_v44 = vadd.f32 1.0, %v2810_v5  ;;  %v1197_v56 = vadd.f32 %v3524_v11, %v3453_v42 }
 0x1c8   : > { %2054 = vst.msk [vmem:[%s3519_s25 + $0x18] sm:$0xff] %vm2050_vm3, %v2812_v6  ;;  %2821 = vpow2.f32 %v2263_v14  ;;  %v1519_v41 = vadd.f32 %v1500_v49, %v1462_v3  ;;  %2631 = vmatmul.mubr.msk.f32.gmra.mrb[58].mxu1 %vm559_vm1, %v1537_v63  ;;  %v1482_v7 = vsub.f32 1.0, %v2812_v6  ;;  %v1463_v36 = vmul.f32 %v2812_v6, %v3326_v19 }
 0x1c9   : > { %2823 = vrcp.f32 %v1409_v44  ;;  %v1321_v43 = vpop.xlane.xlu0 %1320  ;;  %2633 = vmatprep.mubr.msk.f32.mxu1 %vm2876_vm0, %v3879_v62  ;;  %v1202_v6 = vadd.f32 %v3524_v11, %v3461_v55 }
 0x1ca   : > { %v2814_v12 = vpop.eup %2813  ;;  %v1538_v9 = vadd.f32 %v1519_v41, %v1187_v52  ;;  %v2264_v30 = vmul.f32 -1.442695, %v1321_v43  ;;  %v1501_v61 = vmul.f32 %v1482_v7, %v3321_v15 }
 0x1cb   : > { %v2816_v57 = vpop.eup %2815  ;;  %v1410_v60 = vadd.f32 1.0, %v2814_v12 }
 0x1cc   : > { %2055 = vst.msk [vmem:[%s3519_s25 + $0x20] sm:$0xff] %vm2050_vm3, %v2816_v57  ;;  %2825 = vpow2.f32 %v2264_v30  ;;  %v1520_v24 = vadd.f32 %v1501_v61, %v1463_v36  ;;  %2634 = vmatmul.mubr.msk.f32.gmra.mrb[60].mxu1 %vm559_vm1, %v1538_v9  ;;  %v1483_v20 = vsub.f32 1.0, %v2816_v57  ;;  %v1464_v52 = vmul.f32 %v2816_v57, %v3335_v27 }
 0x1cd   : > { %2827 = vrcp.f32 %v1410_v60  ;;  %v1324_v45 = vpop.xlane.xlu1 %1323  ;;  %2636 = vmatprep.mubr.msk.f32.mxu1 %vm2876_vm0, %v3879_v62  ;;  %v1207_v30 = vadd.f32 %v3524_v11, %v3469_v13 }
 0x1ce   : > { %v2818_v19 = vpop.eup %2817  ;;  %v1539_v15 = vadd.f32 %v1520_v24, %v1192_v2  ;;  %v2265_v54 = vmul.f32 -1.442695, %v1324_v45  ;;  %v1502_v5 = vmul.f32 %v1483_v20, %v3330_v23 }
 0x1cf   : > { %v2820_v63 = vpop.eup %2819  ;;  %v1411_v14 = vadd.f32 1.0, %v2818_v19 }
 0x1d0   : > { %2056 = vst.msk [vmem:[%s3519_s25 + $0x28] sm:$0xff] %vm2050_vm3, %v2820_v63  ;;  %2829 = vpow2.f32 %v2265_v54  ;;  %v1521_v3 = vadd.f32 %v1502_v5, %v1464_v52  ;;  %2637 = vmatmul.mubr.msk.f32.gmra.mrb[62].mxu1 %vm559_vm1, %v1539_v15  ;;  %v1484_v42 = vsub.f32 1.0, %v2820_v63  ;;  %v1465_v41 = vmul.f32 %v2820_v63, %v3344_v35 }
 0x1d1   : > { %2831 = vrcp.f32 %v1411_v14  ;;  %v1327_v49 = vpop.xlane.xlu0 %1326  ;;  %2639 = vmatprep.mubr.msk.f32.mxu1 %vm2876_vm0, %v3879_v62 }
 0x1d2   : > { %v2822_v27 = vpop.eup %2821  ;;  %v1540_v23 = vadd.f32 %v1521_v3, %v1197_v56  ;;  %v2266_v44 = vmul.f32 -1.442695, %v1327_v49  ;;  %v1503_v7 = vmul.f32 %v1484_v42, %v3339_v31  ;;  %v1212_v56 = vadd.f32 %v3524_v11, %v3477_v32 }
 0x1d3   : > { %v2824_v43 = vpop.eup %2823  ;;  %v1412_v2 = vadd.f32 1.0, %v2822_v27  ;;  %v1217_v3 = vadd.f32 %v3524_v11, %v3480_v37 }
 0x1d4   : > { %2057 = vst.msk [vmem:[%s3519_s25 + $0x30] sm:$0xff] %vm2050_vm3, %v2824_v43  ;;  %2833 = vpow2.f32 %v2266_v44  ;;  %v1522_v12 = vadd.f32 %v1503_v7, %v1465_v41  ;;  %2640 = vmatmul.mubr.msk.f32.gmra.mrb[64].mxu1 %vm559_vm1, %v1540_v23  ;;  %v1485_v55 = vsub.f32 1.0, %v2824_v43  ;;  %v1466_v61 = vmul.f32 %v2824_v43, %v3353_v40 }
 0x1d5   : > { %2835 = vrcp.f32 %v1412_v2  ;;  %v1330_v9 = vpop.xlane.xlu1 %1329  ;;  %2642 = vmatprep.mubr.msk.f32.mxu1 %vm2876_vm0, %v3879_v62  ;;  %v1222_v7 = vadd.f32 %v3524_v11, %v3482_v47 }
 0x1d6   : > { %v2826_v35 = vpop.eup %2825  ;;  %v1541_v31 = vadd.f32 %v1522_v12, %v1202_v6  ;;  %v2267_v36 = vmul.f32 -1.442695, %v1330_v9  ;;  %v1504_v57 = vmul.f32 %v1485_v55, %v3348_v39 }
 0x1d7   : > { %v2828_v60 = vpop.eup %2827  ;;  %v1413_v24 = vadd.f32 1.0, %v2826_v35 }
 0x1d8   : > { %2058 = vst.msk [vmem:[%s3519_s25 + $0x38] sm:$0xff] %vm2050_vm3, %v2828_v60  ;;  %2837 = vpow2.f32 %v2267_v36  ;;  %v1523_v20 = vadd.f32 %v1504_v57, %v1466_v61  ;;  %2643 = vmatmul.mubr.msk.f32.gmra.mrb[66].mxu1 %vm559_vm1, %v1541_v31  ;;  %v1486_v13 = vsub.f32 1.0, %v2828_v60  ;;  %v1467_v15 = vmul.f32 %v2828_v60, %v3362_v46 }
 0x1d9   : > { %2839 = vrcp.f32 %v1413_v24  ;;  %v1333_v45 = vpop.xlane.xlu0 %1332  ;;  %2645 = vmatprep.mubr.msk.f32.mxu1 %vm2876_vm0, %v3879_v62  ;;  %v1227_v31 = vadd.f32 %v3524_v11, %v3484_v50 }
 0x1da   : > { %v2830_v40 = vpop.eup %2829  ;;  %v1542_v39 = vadd.f32 %v1523_v20, %v1207_v30  ;;  %v2268_v19 = vmul.f32 -1.442695, %v1333_v45  ;;  %v1505_v54 = vmul.f32 %v1486_v13, %v3357_v48  ;;  %v1232_v45 = vadd.f32 %v3524_v11, %v3486_v0 }
 0x1db   : > { %v2832_v52 = vpop.eup %2831  ;;  %v1414_v5 = vadd.f32 1.0, %v2830_v40 }
 0x1dc   : > { %2059 = vst.msk [vmem:[%s3519_s25 + $0x40] sm:$0xff] %vm2050_vm3, %v2832_v52  ;;  %2841 = vpow2.f32 %v2268_v19  ;;  %v1524_v63 = vadd.f32 %v1505_v54, %v1467_v15  ;;  %2646 = vmatmul.mubr.msk.f32.gmra.mrb[68].mxu1 %vm559_vm1, %v1542_v39  ;;  %v1487_v32 = vsub.f32 1.0, %v2832_v52  ;;  %v1468_v49 = vmul.f32 %v2832_v52, %v3371_v51 }
 0x1dd   : > { %2843 = vrcp.f32 %v1414_v5  ;;  %v1336_v14 = vpop.xlane.xlu1 %1335  ;;  %2648 = vmatprep.mubr.msk.f32.mxu1 %vm2876_vm0, %v3879_v62 }
 0x1de   : > { %v2834_v46 = vpop.eup %2833  ;;  %v1543_v48 = vadd.f32 %v1524_v63, %v1212_v56  ;;  %v2269_v42 = vmul.f32 -1.442695, %v1336_v14  ;;  %v1506_v6 = vmul.f32 %v1487_v32, %v3366_v59 }
 0x1df   : > { %v2836_v27 = vpop.eup %2835  ;;  %v1415_v23 = vadd.f32 1.0, %v2834_v46 }
 0x1e0   : > { %2060 = vst.msk [vmem:[%s3519_s25 + $0x48] sm:$0xff] %vm2050_vm3, %v2836_v27  ;;  %2845 = vpow2.f32 %v2269_v42  ;;  %v1525_v44 = vadd.f32 %v1506_v6, %v1468_v49  ;;  %2649 = vmatmul.mubr.msk.f32.gmra.mrb[70].mxu1 %vm559_vm1, %v1543_v48  ;;  %v1488_v37 = vsub.f32 1.0, %v2836_v27  ;;  %v1469_v2 = vmul.f32 %v2836_v27, %v3380_v58 }
 0x1e1   : > { %2847 = vrcp.f32 %v1415_v23  ;;  %v1339_v41 = vpop.xlane.xlu0 %1338  ;;  %2651 = vmatprep.mubr.msk.f32.mxu1 %vm2876_vm0, %v3879_v62 }
 0x1e2   : > { %v2838_v51 = vpop.eup %2837  ;;  %v1544_v59 = vadd.f32 %v1525_v44, %v1217_v3  ;;  %v2270_v43 = vmul.f32 -1.442695, %v1339_v41  ;;  %v1507_v12 = vmul.f32 %v1488_v37, %v3375_v4 }
 0x1e3   : > { %v2840_v55 = vpop.eup %2839  ;;  %v1416_v9 = vadd.f32 1.0, %v2838_v51 }
 0x1e4   : > { %2061 = vst.msk [vmem:[%s3519_s25 + $0x50] sm:$0xff] %vm2050_vm3, %v2840_v55  ;;  %2849 = vpow2.f32 %v2270_v43  ;;  %v1526_v30 = vadd.f32 %v1507_v12, %v1469_v2  ;;  %2652 = vmatmul.mubr.msk.f32.gmra.mrb[72].mxu1 %vm559_vm1, %v1544_v59  ;;  %v1489_v47 = vsub.f32 1.0, %v2840_v55  ;;  %v1470_v61 = vmul.f32 %v2840_v55, %v3390_v1 }
 0x1e5   : > { %2851 = vrcp.f32 %v1416_v9  ;;  %v1342_v35 = vpop.xlane.xlu1 %1341  ;;  %2654 = vmatprep.mubr.msk.f32.mxu1 %vm2876_vm0, %v3879_v62 }
 0x1e6   : > { %v2842_v58 = vpop.eup %2841  ;;  %v1545_v4 = vadd.f32 %v1526_v30, %v1222_v7  ;;  %v2271_v36 = vmul.f32 -1.442695, %v1342_v35  ;;  %v1508_v57 = vmul.f32 %v1489_v47, %v3387_v16  ;;  %v3880_v30 = vld [vmem:[#allocation8_spill] sm:$0xff] }
 0x1e7   : > { %v2844_v60 = vpop.eup %2843  ;;  %v1417_v24 = vadd.f32 1.0, %v2842_v58  ;;  %v1257_v47 = vadd.f32 %v3524_v11, %v3880_v30 }
 0x1e8   : > { %2062 = vst.msk [vmem:[%s3519_s25 + $0x58] sm:$0xff] %vm2050_vm3, %v2844_v60  ;;  %2853 = vpow2.f32 %v2271_v36  ;;  %v1527_v20 = vadd.f32 %v1508_v57, %v1470_v61  ;;  %2655 = vmatmul.mubr.msk.f32.gmra.mrb[74].mxu1 %vm559_vm1, %v1545_v4  ;;  %v1490_v50 = vsub.f32 1.0, %v2844_v60  ;;  %v1471_v40 = vmul.f32 %v2844_v60, %v3400_v28  ;;  %v3883_v61 = vld [vmem:[#allocation9_spill] sm:$0xff]  ;;  %v3884_v60 = vld [vmem:[#allocation6_spill] sm:$0xff] }
 0x1e9   : > { %2855 = vrcp.f32 %v1417_v24  ;;  %v1345_v13 = vpop.xlane.xlu0 %1344  ;;  %2657 = vmatprep.mubr.msk.f32.mxu1 %vm2876_vm0, %v3879_v62  ;;  %v1237_v28 = vadd.f32 %v3524_v11, %v3488_v10  ;;  %v1262_v57 = vadd.f32 %v3524_v11, %v3883_v61 }
 0x1ea   : > { %v2846_v1 = vpop.eup %2845  ;;  %v1546_v16 = vadd.f32 %v1527_v20, %v1227_v31  ;;  %v2272_v56 = vmul.f32 -1.442695, %v1345_v13  ;;  %v1509_v39 = vmul.f32 %v1490_v50, %v3397_v26  ;;  %v3885_v20 = vld [vmem:[#allocation3_spill] sm:$0xff] }
 0x1eb   : > { %v2848_v19 = vpop.eup %2847  ;;  %v1418_v15 = vadd.f32 1.0, %v2846_v1 }
 0x1ec   : > { %2063 = vst.msk [vmem:[%s3519_s25 + $0x60] sm:$0xff] %vm2050_vm3, %v2848_v19  ;;  %2857 = vpow2.f32 %v2272_v56  ;;  %v1528_v54 = vadd.f32 %v1509_v39, %v1471_v40  ;;  %2658 = vmatmul.mubr.msk.f32.gmra.mrb[76].mxu1 %vm559_vm1, %v1546_v16  ;;  %v1491_v0 = vsub.f32 1.0, %v2848_v19  ;;  %v1472_v26 = vmul.f32 %v2848_v19, %v3412_v21  ;;  %v3886_v56 = vld [vmem:[#allocation10_spill] sm:$0xff]  ;;  %v3887_v39 = vld [vmem:[#allocation7_spill] sm:$0xff] }
 0x1ed   : > { %2859 = vrcp.f32 %v1418_v15  ;;  %2660 = vmatprep.mubr.msk.f32.mxu1 %vm2876_vm0, %v3879_v62  ;;  %v1242_v21 = vadd.f32 %v3524_v11, %v3490_v17  ;;  %v1267_v40 = vadd.f32 %v3524_v11, %v3886_v56  ;;  %v3888_v15 = vld [vmem:[#allocation4_spill] sm:$0xff] }
 0x1ee   : > { %v2850_v52 = vpop.eup %2849  ;;  %v1547_v5 = vadd.f32 %v1528_v54, %v1232_v45  ;;  %v1510_v63 = vmul.f32 %v1491_v0, %v3409_v38 }
 0x1ef   : > { %v2852_v32 = vpop.eup %2851  ;;  %v1419_v14 = vadd.f32 1.0, %v2850_v52 }
 0x1f0   : > { %2064 = vst.msk [vmem:[%s3519_s25 + $0x68] sm:$0xff] %vm2050_vm3, %v2852_v32  ;;  %v1529_v3 = vadd.f32 %v1510_v63, %v1472_v26  ;;  %2661 = vmatmul.mubr.msk.f32.gmra.mrb[78].mxu1 %vm559_vm1, %v1547_v5  ;;  %v1492_v46 = vsub.f32 1.0, %v2852_v32  ;;  %v1473_v38 = vmul.f32 %v2852_v32, %v3424_v25  ;;  %v1247_v25 = vadd.f32 %v3524_v11, %v3492_v18  ;;  %v3698_v5 = vld [vmem:[%s3855_s10] ss:$0 sm:$0xff] }
 0x1f1   : > { %2861 = vrcp.f32 %v1419_v14  ;;  %2663 = vmatprep.mubr.msk.f32.mxu1 %vm2876_vm0, %v3879_v62  ;;  %v1252_v18 = vadd.f32 %v3524_v11, %v3494_v34  ;;  %v3881_v34 = vld [vmem:[#allocation5_spill] sm:$0xff] }
 0x1f2   : > { %v2854_v48 = vpop.eup %2853  ;;  %v1548_v42 = vadd.f32 %v1529_v3, %v1237_v28  ;;  %v1511_v10 = vmul.f32 %v1492_v46, %v3421_v53 }
 0x1f3   : > { %v2856_v49 = vpop.eup %2855  ;;  %v1420_v6 = vadd.f32 1.0, %v2854_v48 }
 0x1f4   : > { %2065 = vst.msk [vmem:[%s3519_s25 + $0x70] sm:$0xff] %vm2050_vm3, %v2856_v49  ;;  %v1530_v27 = vadd.f32 %v1511_v10, %v1473_v38  ;;  %2664 = vmatmul.mubr.msk.f32.gmra.mrb[80].mxu1 %vm559_vm1, %v1548_v42  ;;  %v1493_v23 = vsub.f32 1.0, %v2856_v49  ;;  %v1474_v53 = vmul.f32 %v2856_v49, %v3436_v29 }
 0x1f5   : > { %2863 = vrcp.f32 %v1420_v6  ;;  %2666 = vmatprep.mubr.msk.f32.mxu1 %vm2876_vm0, %v3879_v62 }
 0x1f6   : > { %v2858_v44 = vpop.eup %2857  ;;  %v1549_v37 = vadd.f32 %v1530_v27, %v1242_v21  ;;  %v1512_v17 = vmul.f32 %v1493_v23, %v3433_v8 }
 0x1f7   : > { %v2860_v41 = vpop.eup %2859  ;;  %v1421_v7 = vadd.f32 1.0, %v2858_v44 }
 0x1f8   : > { %2066 = vst.msk [vmem:[%s3519_s25 + $0x78] sm:$0xff] %vm2050_vm3, %v2860_v41  ;;  %v1531_v51 = vadd.f32 %v1512_v17, %v1474_v53  ;;  %2667 = vmatmul.mubr.msk.f32.gmra.mrb[82].mxu1 %vm559_vm1, %v1549_v37  ;;  %v1494_v59 = vsub.f32 1.0, %v2860_v41  ;;  %v1475_v29 = vmul.f32 %v2860_v41, %v3448_v33  ;;  %v3882_v33 = vld [vmem:[#allocation2_spill] sm:$0xff] }
 0x1f9   : > { %2865 = vrcp.f32 %v1421_v7  ;;  %2669 = vmatprep.mubr.msk.f32.mxu1 %vm2876_vm0, %v3879_v62 }
 0x1fa   : > { %v1550_v43 = vadd.f32 %v1531_v51, %v1247_v25  ;;  %v1513_v8 = vmul.f32 %v1494_v59, %v3445_v22 }
 0x1fb   : > { %v2862_v2 = vpop.eup %2861 }
 0x1fc   : > { %2067 = vst.msk [vmem:[%s3519_s25 + $0x80] sm:$0xff] %vm2050_vm3, %v2862_v2  ;;  %v1532_v12 = vadd.f32 %v1513_v8, %v1475_v29  ;;  %2670 = vmatmul.mubr.msk.f32.gmra.mrb[84].mxu1 %vm559_vm1, %v1550_v43  ;;  %v1495_v55 = vsub.f32 1.0, %v2862_v2  ;;  %v1476_v35 = vmul.f32 %v2862_v2, %v3881_v34 }
 0x1fd   : > { %2672 = vmatprep.mubr.msk.f32.mxu1 %vm2876_vm0, %v3879_v62 }
 0x1fe   : > { %v1551_v9 = vadd.f32 %v1532_v12, %v1252_v18  ;;  %v1514_v31 = vmul.f32 %v1495_v55, %v3882_v33 }
 0x1ff   : > { %v2864_v22 = vpop.eup %2863 }
 0x200   : > { %2068 = vst.msk [vmem:[%s3519_s25 + $0x88] sm:$0xff] %vm2050_vm3, %v2864_v22  ;;  %v1533_v58 = vadd.f32 %v1514_v31, %v1476_v35  ;;  %2673 = vmatmul.mubr.msk.f32.gmra.mrb[86].mxu1 %vm559_vm1, %v1551_v9  ;;  %v1496_v4 = vsub.f32 1.0, %v2864_v22  ;;  %v1477_v24 = vmul.f32 %v2864_v22, %v3884_v60 }
 0x201   : > { %2675 = vmatprep.mubr.msk.f32.mxu1 %vm2876_vm0, %v3879_v62 }
 0x202   : > { %v1552_v36 = vadd.f32 %v1533_v58, %v1257_v47  ;;  %v1515_v50 = vmul.f32 %v1496_v4, %v3885_v20 }
 0x203   : > { %v2866_v13 = vpop.eup %2865 }
 0x204   : > { %2069 = vst.msk [vmem:[%s3519_s25 + $0x90] sm:$0xff] %vm2050_vm3, %v2866_v13  ;;  %v1534_v45 = vadd.f32 %v1515_v50, %v1477_v24  ;;  %2676 = vmatmul.mubr.msk.f32.gmra.mrb[88].mxu1 %vm559_vm1, %v1552_v36  ;;  %v1497_v1 = vsub.f32 1.0, %v2866_v13  ;;  %v1478_v19 = vmul.f32 %v2866_v13, %v3887_v39 }
 0x205   : > { %2678 = vmatprep.mubr.msk.f32.mxu1 %vm2876_vm0, %v3879_v62 }
 0x206   : > { %v1553_v16 = vadd.f32 %v1534_v45, %v1262_v57  ;;  %v1516_v54 = vmul.f32 %v1497_v1, %v3888_v15 }
 0x208   : > { %v1535_v0 = vadd.f32 %v1516_v54, %v1478_v19  ;;  %2679 = vmatmul.mubr.msk.f32.gmra.mrb[90].mxu1 %vm559_vm1, %v1553_v16 }
 0x209   : > { %2681 = vmatprep.mubr.msk.f32.mxu1 %vm2876_vm0, %v3879_v62 }
 0x20a   : > { %v1554_v52 = vadd.f32 %v1535_v0, %v1267_v40 }
 0x20c   : > { %2682 = vmatmul.mubr.msk.f32.gmra.mrb[92].mxu1 %vm559_vm1, %v1554_v52 }
 0x297   : > { %v1689_v28 = vpop.f32.mrb[56].mxu1 }
 0x298   : > { %v1690_v11 = vadd.f32 %v3698_v5, %v1689_v28  ;;  %v2629_v26 = vpop.f32.mrb[57].mxu1 }
 0x29a   : > { %v1783_v63 = vmax.f32 %v1690_v11, 0.0 }
 0x29b   : > { %v1694_v32 = vpop.f32.mrb[58].mxu1 }
 0x29c   : > { %v1695_v14 = vadd.f32 %v3698_v5, %v1694_v32  ;;  %v2632_v3 = vpop.f32.mrb[59].mxu1  ;;  %2693 = vmatmul.mubr.msk.f32.vlgmr.msra.gmra.mrb[58].mxu0 %vm559_vm1, %v1783_v63 }
 0x29d   : > { %2695 = vmatprep.mubr.msk.f32.mxu0 %vm2876_vm0, %v3879_v62 }
 0x29e   : > { %v1784_v46 = vmax.f32 %v1695_v14, 0.0 }
 0x29f   : > { %v1699_v48 = vpop.f32.mrb[60].mxu1 }
 0x2a0   : > { %v1700_v42 = vadd.f32 %v3698_v5, %v1699_v48  ;;  %v2635_v21 = vpop.f32.mrb[61].mxu1  ;;  %2696 = vmatmul.mubr.msk.f32.gmra.mrb[60].mxu0 %vm559_vm1, %v1784_v46 }
 0x2a1   : > { %2698 = vmatprep.mubr.msk.f32.mxu0 %vm2876_vm0, %v3879_v62 }
 0x2a2   : > { %v1785_v38 = vmax.f32 %v1700_v42, 0.0 }
 0x2a3   : > { %v1704_v10 = vpop.f32.mrb[62].mxu1 }
 0x2a4   : > { %v1705_v49 = vadd.f32 %v3698_v5, %v1704_v10  ;;  %v2638_v6 = vpop.f32.mrb[63].mxu1  ;;  %2699 = vmatmul.mubr.msk.f32.gmra.mrb[62].mxu0 %vm559_vm1, %v1785_v38 }
 0x2a5   : > { %2701 = vmatprep.mubr.msk.f32.mxu0 %vm2876_vm0, %v3879_v62  ;;  %v3777_v6 = vld [vmem:[%s3857_s12] ss:$0 sm:$0xff] }
 0x2a6   : > { %v1786_v27 = vmax.f32 %v1705_v49, 0.0 }
 0x2a7   : > { %v1709_v23 = vpop.f32.mrb[64].mxu1 }
 0x2a8   : > { %v1710_v44 = vadd.f32 %v3698_v5, %v1709_v23  ;;  %v2641_v37 = vpop.f32.mrb[65].mxu1  ;;  %2702 = vmatmul.mubr.msk.f32.gmra.mrb[64].mxu0 %vm559_vm1, %v1786_v27 }
 0x2a9   : > { %2704 = vmatprep.mubr.msk.f32.mxu0 %vm2876_vm0, %v3879_v62 }
 0x2aa   : > { %v1787_v25 = vmax.f32 %v1710_v44, 0.0 }
 0x2ab   : > { %v1714_v53 = vpop.f32.mrb[66].mxu1 }
 0x2ac   : > { %v1715_v17 = vadd.f32 %v3698_v5, %v1714_v53  ;;  %v2644_v41 = vpop.f32.mrb[67].mxu1  ;;  %2705 = vmatmul.mubr.msk.f32.gmra.mrb[66].mxu0 %vm559_vm1, %v1787_v25 }
 0x2ad   : > { %2707 = vmatprep.mubr.msk.f32.mxu0 %vm2876_vm0, %v3879_v62 }
 0x2ae   : > { %v1788_v7 = vmax.f32 %v1715_v17, 0.0 }
 0x2af   : > { %v1719_v51 = vpop.f32.mrb[68].mxu1 }
 0x2b0   : > { %v1720_v59 = vadd.f32 %v3698_v5, %v1719_v51  ;;  %v2647_v43 = vpop.f32.mrb[69].mxu1  ;;  %2708 = vmatmul.mubr.msk.f32.gmra.mrb[68].mxu0 %vm559_vm1, %v1788_v7 }
 0x2b1   : > { %2710 = vmatprep.mubr.msk.f32.mxu0 %vm2876_vm0, %v3879_v62 }
 0x2b2   : > { %v1789_v18 = vmax.f32 %v1720_v59, 0.0 }
 0x2b3   : > { %v1724_v29 = vpop.f32.mrb[70].mxu1 }
 0x2b4   : > { %v1725_v8 = vadd.f32 %v3698_v5, %v1724_v29  ;;  %v2650_v2 = vpop.f32.mrb[71].mxu1  ;;  %2711 = vmatmul.mubr.msk.f32.gmra.mrb[70].mxu0 %vm559_vm1, %v1789_v18 }
 0x2b5   : > { %2713 = vmatprep.mubr.msk.f32.mxu0 %vm2876_vm0, %v3879_v62 }
 0x2b6   : > { %v1790_v12 = vmax.f32 %v1725_v8, 0.0 }
 0x2b7   : > { %v1729_v55 = vpop.f32.mrb[72].mxu1 }
 0x2b8   : > { %v1730_v9 = vadd.f32 %v3698_v5, %v1729_v55  ;;  %v2653_v30 = vpop.f32.mrb[73].mxu1  ;;  %2714 = vmatmul.mubr.msk.f32.gmra.mrb[72].mxu0 %vm559_vm1, %v1790_v12 }
 0x2b9   : > { %2716 = vmatprep.mubr.msk.f32.mxu0 %vm2876_vm0, %v3879_v62 }
 0x2ba   : > { %v1791_v47 = vmax.f32 %v1730_v9, 0.0 }
 0x2bb   : > { %v1734_v34 = vpop.f32.mrb[74].mxu1 }
 0x2bc   : > { %v1735_v35 = vadd.f32 %v3698_v5, %v1734_v34  ;;  %v2656_v33 = vpop.f32.mrb[75].mxu1  ;;  %2717 = vmatmul.mubr.msk.f32.gmra.mrb[74].mxu0 %vm559_vm1, %v1791_v47 }
 0x2bd   : > { %2719 = vmatprep.mubr.msk.f32.mxu0 %vm2876_vm0, %v3879_v62 }
 0x2be   : > { %v1792_v31 = vmax.f32 %v1735_v35, 0.0 }
 0x2bf   : > { %v1739_v22 = vpop.f32.mrb[76].mxu1 }
 0x2c0   : > { %v1740_v58 = vadd.f32 %v3698_v5, %v1739_v22  ;;  %v2659_v4 = vpop.f32.mrb[77].mxu1  ;;  %2720 = vmatmul.mubr.msk.f32.gmra.mrb[76].mxu0 %vm559_vm1, %v1792_v31 }
 0x2c1   : > { %2722 = vmatprep.mubr.msk.f32.mxu0 %vm2876_vm0, %v3879_v62 }
 0x2c2   : > { %v1793_v36 = vmax.f32 %v1740_v58, 0.0 }
 0x2c3   : > { %v1744_v61 = vpop.f32.mrb[78].mxu1 }
 0x2c4   : > { %v1745_v57 = vadd.f32 %v3698_v5, %v1744_v61  ;;  %v2662_v60 = vpop.f32.mrb[79].mxu1  ;;  %2723 = vmatmul.mubr.msk.f32.gmra.mrb[78].mxu0 %vm559_vm1, %v1793_v36 }
 0x2c5   : > { %2725 = vmatprep.mubr.msk.f32.mxu0 %vm2876_vm0, %v3879_v62 }
 0x2c6   : > { %v1794_v24 = vmax.f32 %v1745_v57, 0.0 }
 0x2c7   : > { %v1749_v20 = vpop.f32.mrb[80].mxu1 }
 0x2c8   : > { %v1750_v50 = vadd.f32 %v3698_v5, %v1749_v20  ;;  %v2665_v13 = vpop.f32.mrb[81].mxu1  ;;  %2726 = vmatmul.mubr.msk.f32.gmra.mrb[80].mxu0 %vm559_vm1, %v1794_v24 }
 0x2c9   : > { %2728 = vmatprep.mubr.msk.f32.mxu0 %vm2876_vm0, %v3879_v62 }
 0x2ca   : > { %v1795_v45 = vmax.f32 %v1750_v50, 0.0 }
 0x2cb   : > { %v1754_v1 = vpop.f32.mrb[82].mxu1 }
 0x2cc   : > { %v1755_v16 = vadd.f32 %v3698_v5, %v1754_v1  ;;  %v2668_v56 = vpop.f32.mrb[83].mxu1  ;;  %2729 = vmatmul.mubr.msk.f32.gmra.mrb[82].mxu0 %vm559_vm1, %v1795_v45 }
 0x2cd   : > { %2731 = vmatprep.mubr.msk.f32.mxu0 %vm2876_vm0, %v3879_v62 }
 0x2ce   : > { %v1796_v40 = vmax.f32 %v1755_v16, 0.0 }
 0x2cf   : > { %v1759_v39 = vpop.f32.mrb[84].mxu1 }
 0x2d0   : > { %v1760_v19 = vadd.f32 %v3698_v5, %v1759_v39  ;;  %v2671_v15 = vpop.f32.mrb[85].mxu1  ;;  %2732 = vmatmul.mubr.msk.f32.gmra.mrb[84].mxu0 %vm559_vm1, %v1796_v40 }
 0x2d1   : > { %2734 = vmatprep.mubr.msk.f32.mxu0 %vm2876_vm0, %v3879_v62 }
 0x2d2   : > { %v1797_v54 = vmax.f32 %v1760_v19, 0.0 }
 0x2d3   : > { %v1764_v0 = vpop.f32.mrb[86].mxu1 }
 0x2d4   : > { %v1765_v52 = vadd.f32 %v3698_v5, %v1764_v0  ;;  %v2674_v28 = vpop.f32.mrb[87].mxu1  ;;  %2735 = vmatmul.mubr.msk.f32.gmra.mrb[86].mxu0 %vm559_vm1, %v1797_v54 }
 0x2d5   : > { %2737 = vmatprep.mubr.msk.f32.mxu0 %vm2876_vm0, %v3879_v62 }
 0x2d6   : > { %v1798_v11 = vmax.f32 %v1765_v52, 0.0 }
 0x2d7   : > { %v1769_v26 = vpop.f32.mrb[88].mxu1 }
 0x2d8   : > { %v1770_v63 = vadd.f32 %v3698_v5, %v1769_v26  ;;  %v2677_v32 = vpop.f32.mrb[89].mxu1  ;;  %2738 = vmatmul.mubr.msk.f32.gmra.mrb[88].mxu0 %vm559_vm1, %v1798_v11 }
 0x2d9   : > { %2740 = vmatprep.mubr.msk.f32.mxu0 %vm2876_vm0, %v3879_v62 }
 0x2da   : > { %v1799_v14 = vmax.f32 %v1770_v63, 0.0 }
 0x2db   : > { %v1774_v3 = vpop.f32.mrb[90].mxu1 }
 0x2dc   : > { %v1775_v46 = vadd.f32 %v3698_v5, %v1774_v3  ;;  %v2680_v48 = vpop.f32.mrb[91].mxu1  ;;  %2741 = vmatmul.mubr.msk.f32.gmra.mrb[90].mxu0 %vm559_vm1, %v1799_v14 }
 0x2dd   : > { %2743 = vmatprep.mubr.msk.f32.mxu0 %vm2876_vm0, %v3879_v62 }
 0x2de   : > { %v1800_v42 = vmax.f32 %v1775_v46, 0.0 }
 0x2df   : > { %v1779_v21 = vpop.f32.mrb[92].mxu1 }
 0x2e0   : > { %v1780_v38 = vadd.f32 %v3698_v5, %v1779_v21  ;;  %v2683_v10 = vpop.f32.mrb[93].mxu1  ;;  %2744 = vmatmul.mubr.msk.f32.gmra.mrb[92].mxu0 %vm559_vm1, %v1800_v42 }
 0x2e1   : > { %2746 = vmatprep.mubr.msk.f32.mxu0 %vm2876_vm0, %v3879_v62 }
 0x2e2   : > { %v1801_v49 = vmax.f32 %v1780_v38, 0.0 }
 0x2e4   : > { %2747 = vmatmul.mubr.msk.f32.gmra.mrb[94].mxu0 %vm559_vm1, %v1801_v49 }
 0x36f   : > { %v1936_v5 = vpop.f32.mrb[58].mxu0 }
 0x370   : > { %v1937_v62 = vadd.f32 %v3777_v6, %v1936_v5  ;;  %v2694_v27 = vpop.f32.mrb[59].mxu0 }
 0x372   : > { %2031 = vst.msk [vmem:[%s3783_s20] sm:$0xff] %vm2030_vm4, %v1937_v62 }
 0x373   : > { %v1941_v23 = vpop.f32.mrb[60].mxu0 }
 0x374   : > { %v1942_v44 = vadd.f32 %v3777_v6, %v1941_v23  ;;  %v2697_v37 = vpop.f32.mrb[61].mxu0 }
 0x376   : > { %2032 = vst.msk [vmem:[%s3783_s20 + $0x8] sm:$0xff] %vm2030_vm4, %v1942_v44 }
 0x377   : > { %v1946_v25 = vpop.f32.mrb[62].mxu0 }
 0x378   : > { %v1947_v53 = vadd.f32 %v3777_v6, %v1946_v25  ;;  %v2700_v17 = vpop.f32.mrb[63].mxu0 }
 0x37a   : > { %2033 = vst.msk [vmem:[%s3783_s20 + $0x10] sm:$0xff] %vm2030_vm4, %v1947_v53 }
 0x37b   : > { %v1951_v41 = vpop.f32.mrb[64].mxu0 }
 0x37c   : > { %v1952_v7 = vadd.f32 %v3777_v6, %v1951_v41  ;;  %v2703_v51 = vpop.f32.mrb[65].mxu0 }
 0x37e   : > { %2034 = vst.msk [vmem:[%s3783_s20 + $0x18] sm:$0xff] %vm2030_vm4, %v1952_v7 }
 0x37f   : > { %v1956_v59 = vpop.f32.mrb[66].mxu0 }
 0x380   : > { %v1957_v43 = vadd.f32 %v3777_v6, %v1956_v59  ;;  %v2706_v18 = vpop.f32.mrb[67].mxu0 }
 0x382   : > { %2035 = vst.msk [vmem:[%s3783_s20 + $0x20] sm:$0xff] %vm2030_vm4, %v1957_v43 }
 0x383   : > { %v1961_v29 = vpop.f32.mrb[68].mxu0 }
 0x384   : > { %v1962_v8 = vadd.f32 %v3777_v6, %v1961_v29  ;;  %v2709_v2 = vpop.f32.mrb[69].mxu0 }
 0x386   : > { %2036 = vst.msk [vmem:[%s3783_s20 + $0x28] sm:$0xff] %vm2030_vm4, %v1962_v8 }
 0x387   : > { %v1966_v12 = vpop.f32.mrb[70].mxu0 }
 0x388   : > { %v1967_v55 = vadd.f32 %v3777_v6, %v1966_v12  ;;  %v2712_v9 = vpop.f32.mrb[71].mxu0 }
 0x38a   : > { %2037 = vst.msk [vmem:[%s3783_s20 + $0x30] sm:$0xff] %vm2030_vm4, %v1967_v55 }
 0x38b   : > { %v1971_v30 = vpop.f32.mrb[72].mxu0 }
 0x38c   : > { %v1972_v47 = vadd.f32 %v3777_v6, %v1971_v30  ;;  %v2715_v34 = vpop.f32.mrb[73].mxu0 }
 0x38e   : > { %2038 = vst.msk [vmem:[%s3783_s20 + $0x38] sm:$0xff] %vm2030_vm4, %v1972_v47 }
 0x38f   : > { %v1976_v35 = vpop.f32.mrb[74].mxu0 }
 0x390   : > { %v1977_v33 = vadd.f32 %v3777_v6, %v1976_v35  ;;  %v2718_v31 = vpop.f32.mrb[75].mxu0 }
 0x392   : > { %2039 = vst.msk [vmem:[%s3783_s20 + $0x40] sm:$0xff] %vm2030_vm4, %v1977_v33 }
 0x393   : > { %v1981_v22 = vpop.f32.mrb[76].mxu0 }
 0x394   : > { %v1982_v58 = vadd.f32 %v3777_v6, %v1981_v22  ;;  %v2721_v4 = vpop.f32.mrb[77].mxu0 }
 0x396   : > { %2040 = vst.msk [vmem:[%s3783_s20 + $0x48] sm:$0xff] %vm2030_vm4, %v1982_v58 }
 0x397   : > { %v1986_v36 = vpop.f32.mrb[78].mxu0 }
 0x398   : > { %v1987_v61 = vadd.f32 %v3777_v6, %v1986_v36  ;;  %v2724_v57 = vpop.f32.mrb[79].mxu0 }
 0x39a   : > { %2041 = vst.msk [vmem:[%s3783_s20 + $0x50] sm:$0xff] %vm2030_vm4, %v1987_v61 }
 0x39b   : > { %v1991_v60 = vpop.f32.mrb[80].mxu0 }
 0x39c   : > { %v1992_v24 = vadd.f32 %v3777_v6, %v1991_v60  ;;  %v2727_v20 = vpop.f32.mrb[81].mxu0 }
 0x39e   : > { %2042 = vst.msk [vmem:[%s3783_s20 + $0x58] sm:$0xff] %vm2030_vm4, %v1992_v24 }
 0x39f   : > { %v1996_v50 = vpop.f32.mrb[82].mxu0 }
 0x3a0   : > { %v1997_v13 = vadd.f32 %v3777_v6, %v1996_v50  ;;  %v2730_v45 = vpop.f32.mrb[83].mxu0 }
 0x3a2   : > { %2043 = vst.msk [vmem:[%s3783_s20 + $0x60] sm:$0xff] %vm2030_vm4, %v1997_v13 }
 0x3a3   : > { %v2001_v1 = vpop.f32.mrb[84].mxu0 }
 0x3a4   : > { %v2002_v16 = vadd.f32 %v3777_v6, %v2001_v1  ;;  %v2733_v56 = vpop.f32.mrb[85].mxu0 }
 0x3a6   : > { %2044 = vst.msk [vmem:[%s3783_s20 + $0x68] sm:$0xff] %vm2030_vm4, %v2002_v16 }
 0x3a7   : > { %v2006_v40 = vpop.f32.mrb[86].mxu0 }
 0x3a8   : > { %v2007_v39 = vadd.f32 %v3777_v6, %v2006_v40  ;;  %v2736_v19 = vpop.f32.mrb[87].mxu0 }
 0x3aa   : > { %2045 = vst.msk [vmem:[%s3783_s20 + $0x70] sm:$0xff] %vm2030_vm4, %v2007_v39 }
 0x3ab   : > { %v2011_v15 = vpop.f32.mrb[88].mxu0 }
 0x3ac   : > { %v2012_v54 = vadd.f32 %v3777_v6, %v2011_v15  ;;  %v2739_v0 = vpop.f32.mrb[89].mxu0 }
 0x3ae   : > { %2046 = vst.msk [vmem:[%s3783_s20 + $0x78] sm:$0xff] %vm2030_vm4, %v2012_v54 }
 0x3af   : > { %v2016_v52 = vpop.f32.mrb[90].mxu0 }
 0x3b0   : > { %v2017_v28 = vadd.f32 %v3777_v6, %v2016_v52  ;;  %v2742_v11 = vpop.f32.mrb[91].mxu0 }
 0x3b2   : > { %2047 = vst.msk [vmem:[%s3783_s20 + $0x80] sm:$0xff] %vm2030_vm4, %v2017_v28 }
 0x3b3   : > { %v2021_v26 = vpop.f32.mrb[92].mxu0 }
 0x3b4   : > { %v2022_v63 = vadd.f32 %v3777_v6, %v2021_v26  ;;  %v2745_v32 = vpop.f32.mrb[93].mxu0 }
 0x3b6   : > { %2048 = vst.msk [vmem:[%s3783_s20 + $0x88] sm:$0xff] %vm2030_vm4, %v2022_v63 }
 0x3b7   : > { %v2026_v14 = vpop.f32.mrb[94].mxu0 }
 0x3b8   : > { %v2027_v3 = vadd.f32 %v3777_v6, %v2026_v14  ;;  %v2748_v46 = vpop.f32.mrb[95].mxu0 }
 0x3ba   : > { %2049 = vst.msk [vmem:[%s3783_s20 + $0x90] sm:$0xff] %vm2030_vm4, %v2027_v3 }
 0x3bb PF: > { %s25_s29 = sadd.s32 1, %s2873_s29  }
 0x3bc   : > { %p22_p4 = scmp.ge.s32.totalorder %s25_s29, 4  }
 0x3be   :  { %24 = sbr.rel (!%p22_p4) target bundleno = 1 (0x1), region = 120 }

</bundles_post_ra>
